<compile_context>
chip_gen: v7x
topology: tpu7x:2x2x1
jax: 0.10.0
libtpu: 0.0.40
codegen_flags: <defaults>
</compile_context>

<pallas_src>
import functools

import jax
import jax.numpy as jnp
from jax.experimental import pallas as pl
from jax.experimental.pallas import tpu as pltpu


_VMEM = pl.BlockSpec(memory_space=pltpu.MemorySpace.VMEM)
_SMEM = pl.BlockSpec(memory_space=pltpu.MemorySpace.SMEM)

_F32_MIN = float(jnp.finfo(jnp.float32).min)


# ----------------------------------------------------------------------------
# In-kernel helpers (operate on values; everything stays VMEM/vreg resident)
# ----------------------------------------------------------------------------
def _layer_normal(y):
    # torch.std_mean with dim=None: global mean, unbiased (N-1) std.
    # Two independent full reductions (sum, sum-of-squares) instead of
    # mean -> broadcast-subtract -> square -> second reduction.
    n = float(y.size)
    s = jnp.sum(y)
    ss = jnp.sum(y * y)
    mean = s / n
    var = jnp.maximum((ss - n * mean * mean) / (n - 1.0), 0.0)
    return (y - mean) / (jnp.sqrt(var) + 1e-5)


def _elu(z):
    # ELU(alpha=1); clamp the exp argument so no inf is ever produced.
    return jnp.where(z > 0.0, z, jnp.exp(jnp.minimum(z, 0.0)) - 1.0)


def _softmax_lastdim(y):
    y = y - jnp.max(y, axis=-1, keepdims=True)
    e = jnp.exp(y)
    return e / jnp.sum(e, axis=-1, keepdims=True)


def _segment_reduce(h, num_segments, seg_len, op):
    # Per-graph reduction over equal-size contiguous node blocks.
    # Uses iota masks + sublane reductions (no reshape -> robust Mosaic lowering).
    n, f = h.shape
    row = jax.lax.broadcasted_iota(jnp.int32, (n, f), 0)
    outs = []
    for g in range(num_segments):
        mask = (row >= g * seg_len) & (row < (g + 1) * seg_len)
        if op == "max":
            v = jnp.max(jnp.where(mask, h, _F32_MIN), axis=0, keepdims=True)
        else:  # mean
            v = jnp.sum(jnp.where(mask, h, 0.0), axis=0, keepdims=True) / float(seg_len)
        outs.append(v)
    return jnp.concatenate(outs, axis=0)  # [num_segments, f]


# ----------------------------------------------------------------------------
# Fused forward kernel
# ----------------------------------------------------------------------------
def _gnn_complex2_kernel(a_ref, x_ref, wn_ref, bn_ref, wg_ref, bg_ref, mix_ref,
                         out_ref, pix_ref):
    n_nodes, fmax = x_ref.shape
    num_graphs, classes = out_ref.shape
    n_per = n_nodes // num_graphs
    nlayer = wn_ref.shape[0]

    a_hat = a_ref[...]          # [N, N] normalized batched-graph adjacency
    x = x_ref[...]              # [N, Fmax] node features (zero-padded cols)
    mixw = mix_ref[0]           # scalar mixing parameter (nn.Parameter, 0.5)

    # dgl.knn_graph(onefeat, k=len(onefeat)): every graph-node is a neighbor of
    # every other (self included, distance 0) -> fully-connected adjacency with
    # self-loops; GraphConv 'both' normalization makes every entry 1/G.
    a_knn = jnp.full((num_graphs, num_graphs), 1.0 / num_graphs, jnp.float32)

    def conv(a, h, w_ref, b_ref, layer):
        # GraphConv-style block: A_hat @ (H @ W) + b  (weights zero-padded to Fmax)
        w = w_ref[layer]                                   # [Fmax, Fmax]
        b = b_ref[layer]                                   # [1, Fmax]
        hw = jnp.dot(h, w, preferred_element_type=jnp.float32)
        return jnp.dot(a, hw, preferred_element_type=jnp.float32) + b

    # onefeat = dgl.readout_nodes(g, 'feat', op='mean')  -> [G, Fmax]
    onefeat = _segment_reduce(x, num_graphs, n_per, "mean")

    # layer 0 (dropout p=0 -> identity)
    h1 = _elu(_layer_normal(conv(a_knn, onefeat, wg_ref, bg_ref, 0)))   # [G, Fmax]
    h = _elu(_layer_normal(conv(a_hat, x, wn_ref, bn_ref, 0)))          # [N, Fmax]
    readout = _segment_reduce(h, num_graphs, n_per, "max")              # [G, Fmax]

    # middle layers 1 .. nlayer-2 (h1 uses the readout of the *previous* h)
    for layer in range(1, nlayer - 1):
        h1 = _elu(_layer_normal(conv(a_knn, h1 + readout, wg_ref, bg_ref, layer)))
        h = _elu(_layer_normal(conv(a_hat, h, wn_ref, bn_ref, layer)))
        readout = _segment_reduce(h, num_graphs, n_per, "max")

    # final layer: no layer_normal / ELU
    h1 = conv(a_knn, h1 + readout, wg_ref, bg_ref, nlayer - 1)          # [G, Fmax]
    pixelpred = conv(a_hat, h, wn_ref, bn_ref, nlayer - 1)              # [N, Fmax]
    hmax = _segment_reduce(pixelpred, num_graphs, n_per, "max")         # [G, Fmax]

    mixed = mixw * hmax + (1.0 - mixw) * h1                             # [G, Fmax]

    out_ref[...] = _softmax_lastdim(mixed[:, :classes])
    pix_ref[...] = _softmax_lastdim(pixelpred[:, :classes])


@functools.partial(jax.jit, static_argnames=("num_graphs", "classes"))
def gnn_complex2_forward(a_hat, ndata, w_node, b_node, w_graph, b_graph, mix,
                         num_graphs, classes):
    n_nodes, inchannel = ndata.shape
    fmax = w_node.shape[-1]
    x = ndata
    if inchannel < fmax:
        x = jnp.pad(ndata, ((0, 0), (0, fmax - inchannel)))

    out, pixelpred = pl.pallas_call(
        _gnn_complex2_kernel,
        out_shape=(jax.ShapeDtypeStruct((num_graphs, classes), jnp.float32),
                   jax.ShapeDtypeStruct((n_nodes, classes), jnp.float32)),
        in_specs=[_VMEM, _VMEM, _VMEM, _VMEM, _VMEM, _VMEM, _SMEM],
        out_specs=(_VMEM, _VMEM),
    )(a_hat, x, w_node, b_node, w_graph, b_graph, mix)
    return out, pixelpred


# ----------------------------------------------------------------------------
# Host-side parameter packing (done once, not per forward call)
# ----------------------------------------------------------------------------
def pack_gnn_params(params, nlayer):
    dims = []
    for l in range(nlayer):
        dims += list(params[f"W{l}"].shape)
    fmax = max(dims)
    hidden = params["W0"].shape[1]
    # global layer_normal sees every element of the hidden activations, so the
    # zero-padding scheme is only exact when hidden already equals fmax.
    assert hidden == fmax, "hiddensize must be >= inchannel and >= classes"

    def pack(suffix):
        ws, bs = [], []
        for l in range(nlayer):
            w = params[f"W{l}{suffix}"].astype(jnp.float32)
            b = params[f"b{l}{suffix}"].astype(jnp.float32)
            fin, fout = w.shape
            wp = jnp.zeros((fmax, fmax), jnp.float32).at[:fin, :fout].set(w)
            bp = jnp.zeros((1, fmax), jnp.float32).at[0, :fout].set(b)
            ws.append(wp)
            bs.append(bp)
        return jnp.stack(ws), jnp.stack(bs)   # [nlayer,Fmax,Fmax], [nlayer,1,Fmax]

    w_node, b_node = pack("")      # conv{l}
    w_graph, b_graph = pack("_1")  # conv{l}_1
    mix = params["weight"].reshape(1).astype(jnp.float32)
    return w_node, b_node, w_graph, b_graph, mix


def sym_norm(adj):
    # GraphConv 'both' symmetric normalization: D^{-1/2} A D^{-1/2}
    deg_in = jnp.maximum(adj.sum(axis=1), 1.0)
    deg_out = jnp.maximum(adj.sum(axis=0), 1.0)
    return adj / jnp.sqrt(deg_in)[:, None] / jnp.sqrt(deg_out)[None, :]


# ----------------------------------------------------------------------------
# Main: deterministic synthetic batched graph / parameters
# ----------------------------------------------------------------------------
if __name__ == "__main__":
    key = jax.random.PRNGKey(0)

    # model config (small but consistent with the module)
    inchannel, hiddensize, classes, nlayer = 8, 32, 4, 4
    num_graphs, nodes_per_graph = 4, 4
    n_nodes = num_graphs * nodes_per_graph          # 16

    # --- deterministic parameters for both conv branches ---
    params = {}
    dims = [inchannel] + [hiddensize] * (nlayer - 1) + [classes]
    for layer in range(nlayer):
        fin, fout = dims[layer], dims[layer + 1]
        key, kw, kb, kw1, kb1 = jax.random.split(key, 5)
        params[f"W{layer}"] = jax.random.normal(kw, (fin, fout), jnp.float32) * 0.1
        params[f"b{layer}"] = jax.random.normal(kb, (fout,), jnp.float32) * 0.01
        params[f"W{layer}_1"] = jax.random.normal(kw1, (fin, fout), jnp.float32) * 0.1
        params[f"b{layer}_1"] = jax.random.normal(kb1, (fout,), jnp.float32) * 0.01
    params["weight"] = jnp.array([0.5], jnp.float32)   # nn.Parameter([0.5])

    # --- deterministic batched graph: block-diagonal adjacency + self-loops ---
    key, ka = jax.random.split(key)
    rand = jax.random.uniform(ka, (n_nodes, n_nodes))
    block_mask = jnp.kron(jnp.eye(num_graphs),
                          jnp.ones((nodes_per_graph, nodes_per_graph)))
    adj = ((rand > 0.5).astype(jnp.float32)) * block_mask
    adj = jnp.maximum(adj, adj.T)                   # undirected
    adj = jnp.maximum(adj, jnp.eye(n_nodes))        # self-loops
    a_hat = sym_norm(adj)

    # --- node features ---
    key, kx = jax.random.split(key)
    ndata = jax.random.normal(kx, (n_nodes, inchannel), jnp.float32)

    # --- pack parameters once, run the fused forward ---
    w_node, b_node, w_graph, b_graph, mix = pack_gnn_params(params, nlayer)
    out, pixelpred = gnn_complex2_forward(a_hat, ndata, w_node, b_node,
                                          w_graph, b_graph, mix,
                                          num_graphs=num_graphs, classes=classes)
    out = jax.block_until_ready(out)
    pixelpred = jax.block_until_ready(pixelpred)

    assert out.shape == (num_graphs, classes)
    assert pixelpred.shape == (n_nodes, classes)
    assert bool(jnp.all(jnp.isfinite(out)))
    assert bool(jnp.all(jnp.isfinite(pixelpred)))
    # softmax rows sum to 1
    assert jnp.allclose(jnp.sum(out, axis=-1), 1.0, atol=1e-5)
    assert jnp.allclose(jnp.sum(pixelpred, axis=-1), 1.0, atol=1e-5)

    print("KERNEL_OK")
</pallas_src>

<mosaic_0001>
module attributes {stable_mosaic.version = 11 : i64} {
  func.func @_gnn_complex2_kernel(%arg0: memref<16x16xf32, #tpu.memory_space<vmem>>, %arg1: memref<16x32xf32, #tpu.memory_space<vmem>>, %arg2: memref<4x32x32xf32, #tpu.memory_space<vmem>>, %arg3: memref<4x1x32xf32, #tpu.memory_space<vmem>>, %arg4: memref<4x32x32xf32, #tpu.memory_space<vmem>>, %arg5: memref<4x1x32xf32, #tpu.memory_space<vmem>>, %arg6: memref<1xf32, #tpu.memory_space<smem>>, %arg7: memref<4x4xf32, #tpu.memory_space<vmem>>, %arg8: memref<16x4xf32, #tpu.memory_space<vmem>>) attributes {dimension_semantics = [], scalar_prefetch = 0 : i64, scratch_operands = 0 : i64, tpu.core_type = #tpu.core_type<tc>} {
    %c0 = arith.constant 0 : index
    %c0_0 = arith.constant 0 : index
    %0 = vector.load %arg0[%c0, %c0_0] : memref<16x16xf32, #tpu.memory_space<vmem>>, vector<16x16xf32>
    %c0_1 = arith.constant 0 : index
    %c0_2 = arith.constant 0 : index
    %1 = vector.load %arg1[%c0_1, %c0_2] : memref<16x32xf32, #tpu.memory_space<vmem>>, vector<16x32xf32>
    %c0_3 = arith.constant 0 : index
    %2 = memref.load %arg6[%c0_3] : memref<1xf32, #tpu.memory_space<smem>>
    %cst = arith.constant 2.500000e-01 : f32
    %3 = vector.broadcast %cst : f32 to vector<4x4xf32>
    %4 = tpu.iota {dimensions = array<i32: 0>} : vector<16x32xi32>
    %c0_i32 = arith.constant 0 : i32
    %5 = vector.broadcast %c0_i32 : i32 to vector<16x32xi32>
    %6 = arith.cmpi sge, %4, %5 : vector<16x32xi32>
    %c4_i32 = arith.constant 4 : i32
    %7 = vector.broadcast %c4_i32 : i32 to vector<16x32xi32>
    %8 = arith.cmpi slt, %4, %7 : vector<16x32xi32>
    %9 = arith.andi %6, %8 : vector<16x32xi1>
    %cst_4 = arith.constant 0.000000e+00 : f32
    %10 = vector.broadcast %cst_4 : f32 to vector<16x32xf32>
    %11 = arith.select %9, %1, %10 : vector<16x32xi1>, vector<16x32xf32>
    %cst_5 = arith.constant dense<0.000000e+00> : vector<32xf32>
    %12 = vector.multi_reduction <add>, %11, %cst_5 [0] : vector<16x32xf32> to vector<32xf32>
    %13 = vector.shape_cast %12 : vector<32xf32> to vector<1x32xf32>
    %cst_6 = arith.constant 4.000000e+00 : f32
    %14 = vector.broadcast %cst_6 : f32 to vector<1x32xf32>
    %15 = arith.divf %13, %14 : vector<1x32xf32>
    %c4_i32_7 = arith.constant 4 : i32
    %16 = vector.broadcast %c4_i32_7 : i32 to vector<16x32xi32>
    %17 = arith.cmpi sge, %4, %16 : vector<16x32xi32>
    %c8_i32 = arith.constant 8 : i32
    %18 = vector.broadcast %c8_i32 : i32 to vector<16x32xi32>
    %19 = arith.cmpi slt, %4, %18 : vector<16x32xi32>
    %20 = arith.andi %17, %19 : vector<16x32xi1>
    %cst_8 = arith.constant 0.000000e+00 : f32
    %21 = vector.broadcast %cst_8 : f32 to vector<16x32xf32>
    %22 = arith.select %20, %1, %21 : vector<16x32xi1>, vector<16x32xf32>
    %cst_9 = arith.constant dense<0.000000e+00> : vector<32xf32>
    %23 = vector.multi_reduction <add>, %22, %cst_9 [0] : vector<16x32xf32> to vector<32xf32>
    %24 = vector.shape_cast %23 : vector<32xf32> to vector<1x32xf32>
    %cst_10 = arith.constant 4.000000e+00 : f32
    %25 = vector.broadcast %cst_10 : f32 to vector<1x32xf32>
    %26 = arith.divf %24, %25 : vector<1x32xf32>
    %c8_i32_11 = arith.constant 8 : i32
    %27 = vector.broadcast %c8_i32_11 : i32 to vector<16x32xi32>
    %28 = arith.cmpi sge, %4, %27 : vector<16x32xi32>
    %c12_i32 = arith.constant 12 : i32
    %29 = vector.broadcast %c12_i32 : i32 to vector<16x32xi32>
    %30 = arith.cmpi slt, %4, %29 : vector<16x32xi32>
    %31 = arith.andi %28, %30 : vector<16x32xi1>
    %cst_12 = arith.constant 0.000000e+00 : f32
    %32 = vector.broadcast %cst_12 : f32 to vector<16x32xf32>
    %33 = arith.select %31, %1, %32 : vector<16x32xi1>, vector<16x32xf32>
    %cst_13 = arith.constant dense<0.000000e+00> : vector<32xf32>
    %34 = vector.multi_reduction <add>, %33, %cst_13 [0] : vector<16x32xf32> to vector<32xf32>
    %35 = vector.shape_cast %34 : vector<32xf32> to vector<1x32xf32>
    %cst_14 = arith.constant 4.000000e+00 : f32
    %36 = vector.broadcast %cst_14 : f32 to vector<1x32xf32>
    %37 = arith.divf %35, %36 : vector<1x32xf32>
    %c12_i32_15 = arith.constant 12 : i32
    %38 = vector.broadcast %c12_i32_15 : i32 to vector<16x32xi32>
    %39 = arith.cmpi sge, %4, %38 : vector<16x32xi32>
    %c16_i32 = arith.constant 16 : i32
    %40 = vector.broadcast %c16_i32 : i32 to vector<16x32xi32>
    %41 = arith.cmpi slt, %4, %40 : vector<16x32xi32>
    %42 = arith.andi %39, %41 : vector<16x32xi1>
    %cst_16 = arith.constant 0.000000e+00 : f32
    %43 = vector.broadcast %cst_16 : f32 to vector<16x32xf32>
    %44 = arith.select %42, %1, %43 : vector<16x32xi1>, vector<16x32xf32>
    %cst_17 = arith.constant dense<0.000000e+00> : vector<32xf32>
    %45 = vector.multi_reduction <add>, %44, %cst_17 [0] : vector<16x32xf32> to vector<32xf32>
    %46 = vector.shape_cast %45 : vector<32xf32> to vector<1x32xf32>
    %cst_18 = arith.constant 4.000000e+00 : f32
    %47 = vector.broadcast %cst_18 : f32 to vector<1x32xf32>
    %48 = arith.divf %46, %47 : vector<1x32xf32>
    %49 = tpu.concatenate %15, %26, %37, %48 in 0 : vector<1x32xf32>, vector<1x32xf32>, vector<1x32xf32>, vector<1x32xf32> -> vector<4x32xf32>
    %c0_19 = arith.constant 0 : index
    %c0_20 = arith.constant 0 : index
    %c0_21 = arith.constant 0 : index
    %50 = vector.load %arg4[%c0_19, %c0_20, %c0_21] : memref<4x32x32xf32, #tpu.memory_space<vmem>>, vector<1x32x32xf32>
    %51 = vector.shape_cast %50 : vector<1x32x32xf32> to vector<32x32xf32>
    %c0_22 = arith.constant 0 : index
    %c0_23 = arith.constant 0 : index
    %c0_24 = arith.constant 0 : index
    %52 = vector.load %arg5[%c0_22, %c0_23, %c0_24] : memref<4x1x32xf32, #tpu.memory_space<vmem>>, vector<1x1x32xf32>
    %53 = vector.shape_cast %52 : vector<1x1x32xf32> to vector<1x32xf32>
    %cst_25 = arith.constant dense<0.000000e+00> : vector<4x32xf32>
    %54 = tpu.matmul %49, %51, %cst_25 {dimension_numbers = #tpu.dot_dimension_numbers<[1], [0], [0], [1], [0, 0, 1, 1], [], []>} : vector<4x32xf32>, vector<32x32xf32>, vector<4x32xf32> -> vector<4x32xf32>
    %cst_26 = arith.constant dense<0.000000e+00> : vector<4x32xf32>
    %55 = tpu.matmul %3, %54, %cst_26 {dimension_numbers = #tpu.dot_dimension_numbers<[1], [0], [0], [1], [0, 0, 1, 1], [], []>} : vector<4x4xf32>, vector<4x32xf32>, vector<4x32xf32> -> vector<4x32xf32>
    %56 = vector.broadcast %53 : vector<1x32xf32> to vector<4x32xf32>
    %57 = arith.addf %55, %56 : vector<4x32xf32>
    %58 = vector.shape_cast %57 : vector<4x32xf32> to vector<1x4x32xf32>
    %cst_27 = arith.constant dense<0.000000e+00> : vector<1xf32>
    %59 = vector.multi_reduction <add>, %58, %cst_27 [1, 2] : vector<1x4x32xf32> to vector<1xf32>
    %60 = vector.shape_cast %59 : vector<1xf32> to vector<1x1x1xf32>
    %61 = vector.extract %60[0, 0, 0] : f32 from vector<1x1x1xf32>
    %62 = arith.mulf %57, %57 : vector<4x32xf32>
    %63 = vector.shape_cast %62 : vector<4x32xf32> to vector<1x4x32xf32>
    %cst_28 = arith.constant dense<0.000000e+00> : vector<1xf32>
    %64 = vector.multi_reduction <add>, %63, %cst_28 [1, 2] : vector<1x4x32xf32> to vector<1xf32>
    %65 = vector.shape_cast %64 : vector<1xf32> to vector<1x1x1xf32>
    %66 = vector.extract %65[0, 0, 0] : f32 from vector<1x1x1xf32>
    %cst_29 = arith.constant 1.280000e+02 : f32
    %67 = arith.divf %61, %cst_29 : f32
    %cst_30 = arith.constant 1.280000e+02 : f32
    %68 = arith.mulf %cst_30, %67 : f32
    %69 = arith.mulf %68, %67 : f32
    %70 = arith.subf %66, %69 : f32
    %cst_31 = arith.constant 1.270000e+02 : f32
    %71 = arith.divf %70, %cst_31 : f32
    %cst_32 = arith.constant 0.000000e+00 : f32
    %72 = arith.maximumf %71, %cst_32 : f32
    %73 = vector.broadcast %67 : f32 to vector<4x32xf32>
    %74 = arith.subf %57, %73 : vector<4x32xf32>
    %75 = math.sqrt %72 : f32
    %cst_33 = arith.constant 9.99999974E-6 : f32
    %76 = arith.addf %75, %cst_33 : f32
    %77 = vector.broadcast %76 : f32 to vector<4x32xf32>
    %78 = arith.divf %74, %77 : vector<4x32xf32>
    %cst_34 = arith.constant 0.000000e+00 : f32
    %79 = vector.broadcast %cst_34 : f32 to vector<4x32xf32>
    %80 = arith.cmpf ogt, %78, %79 : vector<4x32xf32>
    %cst_35 = arith.constant 0.000000e+00 : f32
    %81 = vector.broadcast %cst_35 : f32 to vector<4x32xf32>
    %82 = arith.minimumf %78, %81 : vector<4x32xf32>
    %83 = math.exp %82 : vector<4x32xf32>
    %cst_36 = arith.constant 1.000000e+00 : f32
    %84 = vector.broadcast %cst_36 : f32 to vector<4x32xf32>
    %85 = arith.subf %83, %84 : vector<4x32xf32>
    %86 = arith.select %80, %78, %85 : vector<4x32xi1>, vector<4x32xf32>
    %c0_37 = arith.constant 0 : index
    %c0_38 = arith.constant 0 : index
    %c0_39 = arith.constant 0 : index
    %87 = vector.load %arg2[%c0_37, %c0_38, %c0_39] : memref<4x32x32xf32, #tpu.memory_space<vmem>>, vector<1x32x32xf32>
    %88 = vector.shape_cast %87 : vector<1x32x32xf32> to vector<32x32xf32>
    %c0_40 = arith.constant 0 : index
    %c0_41 = arith.constant 0 : index
    %c0_42 = arith.constant 0 : index
    %89 = vector.load %arg3[%c0_40, %c0_41, %c0_42] : memref<4x1x32xf32, #tpu.memory_space<vmem>>, vector<1x1x32xf32>
    %90 = vector.shape_cast %89 : vector<1x1x32xf32> to vector<1x32xf32>
    %cst_43 = arith.constant dense<0.000000e+00> : vector<16x32xf32>
    %91 = tpu.matmul %1, %88, %cst_43 {dimension_numbers = #tpu.dot_dimension_numbers<[1], [0], [0], [1], [0, 0, 1, 1], [], []>} : vector<16x32xf32>, vector<32x32xf32>, vector<16x32xf32> -> vector<16x32xf32>
    %cst_44 = arith.constant dense<0.000000e+00> : vector<16x32xf32>
    %92 = tpu.matmul %0, %91, %cst_44 {dimension_numbers = #tpu.dot_dimension_numbers<[1], [0], [0], [1], [0, 0, 1, 1], [], []>} : vector<16x16xf32>, vector<16x32xf32>, vector<16x32xf32> -> vector<16x32xf32>
    %93 = vector.broadcast %90 : vector<1x32xf32> to vector<16x32xf32>
    %94 = arith.addf %92, %93 : vector<16x32xf32>
    %95 = vector.shape_cast %94 : vector<16x32xf32> to vector<1x16x32xf32>
    %cst_45 = arith.constant dense<0.000000e+00> : vector<1xf32>
    %96 = vector.multi_reduction <add>, %95, %cst_45 [1, 2] : vector<1x16x32xf32> to vector<1xf32>
    %97 = vector.shape_cast %96 : vector<1xf32> to vector<1x1x1xf32>
    %98 = vector.extract %97[0, 0, 0] : f32 from vector<1x1x1xf32>
    %99 = arith.mulf %94, %94 : vector<16x32xf32>
    %100 = vector.shape_cast %99 : vector<16x32xf32> to vector<1x16x32xf32>
    %cst_46 = arith.constant dense<0.000000e+00> : vector<1xf32>
    %101 = vector.multi_reduction <add>, %100, %cst_46 [1, 2] : vector<1x16x32xf32> to vector<1xf32>
    %102 = vector.shape_cast %101 : vector<1xf32> to vector<1x1x1xf32>
    %103 = vector.extract %102[0, 0, 0] : f32 from vector<1x1x1xf32>
    %cst_47 = arith.constant 5.120000e+02 : f32
    %104 = arith.divf %98, %cst_47 : f32
    %cst_48 = arith.constant 5.120000e+02 : f32
    %105 = arith.mulf %cst_48, %104 : f32
    %106 = arith.mulf %105, %104 : f32
    %107 = arith.subf %103, %106 : f32
    %cst_49 = arith.constant 5.110000e+02 : f32
    %108 = arith.divf %107, %cst_49 : f32
    %cst_50 = arith.constant 0.000000e+00 : f32
    %109 = arith.maximumf %108, %cst_50 : f32
    %110 = vector.broadcast %104 : f32 to vector<16x32xf32>
    %111 = arith.subf %94, %110 : vector<16x32xf32>
    %112 = math.sqrt %109 : f32
    %cst_51 = arith.constant 9.99999974E-6 : f32
    %113 = arith.addf %112, %cst_51 : f32
    %114 = vector.broadcast %113 : f32 to vector<16x32xf32>
    %115 = arith.divf %111, %114 : vector<16x32xf32>
    %cst_52 = arith.constant 0.000000e+00 : f32
    %116 = vector.broadcast %cst_52 : f32 to vector<16x32xf32>
    %117 = arith.cmpf ogt, %115, %116 : vector<16x32xf32>
    %cst_53 = arith.constant 0.000000e+00 : f32
    %118 = vector.broadcast %cst_53 : f32 to vector<16x32xf32>
    %119 = arith.minimumf %115, %118 : vector<16x32xf32>
    %120 = math.exp %119 : vector<16x32xf32>
    %cst_54 = arith.constant 1.000000e+00 : f32
    %121 = vector.broadcast %cst_54 : f32 to vector<16x32xf32>
    %122 = arith.subf %120, %121 : vector<16x32xf32>
    %123 = arith.select %117, %115, %122 : vector<16x32xi1>, vector<16x32xf32>
    %124 = tpu.iota {dimensions = array<i32: 0>} : vector<16x32xi32>
    %c0_i32_55 = arith.constant 0 : i32
    %125 = vector.broadcast %c0_i32_55 : i32 to vector<16x32xi32>
    %126 = arith.cmpi sge, %124, %125 : vector<16x32xi32>
    %c4_i32_56 = arith.constant 4 : i32
    %127 = vector.broadcast %c4_i32_56 : i32 to vector<16x32xi32>
    %128 = arith.cmpi slt, %124, %127 : vector<16x32xi32>
    %129 = arith.andi %126, %128 : vector<16x32xi1>
    %cst_57 = arith.constant -3.40282347E+38 : f32
    %130 = vector.broadcast %cst_57 : f32 to vector<16x32xf32>
    %131 = arith.select %129, %123, %130 : vector<16x32xi1>, vector<16x32xf32>
    %cst_58 = arith.constant dense<0xFF800000> : vector<32xf32>
    %132 = vector.multi_reduction <maximumf>, %131, %cst_58 [0] : vector<16x32xf32> to vector<32xf32>
    %133 = vector.shape_cast %132 : vector<32xf32> to vector<1x32xf32>
    %c4_i32_59 = arith.constant 4 : i32
    %134 = vector.broadcast %c4_i32_59 : i32 to vector<16x32xi32>
    %135 = arith.cmpi sge, %124, %134 : vector<16x32xi32>
    %c8_i32_60 = arith.constant 8 : i32
    %136 = vector.broadcast %c8_i32_60 : i32 to vector<16x32xi32>
    %137 = arith.cmpi slt, %124, %136 : vector<16x32xi32>
    %138 = arith.andi %135, %137 : vector<16x32xi1>
    %cst_61 = arith.constant -3.40282347E+38 : f32
    %139 = vector.broadcast %cst_61 : f32 to vector<16x32xf32>
    %140 = arith.select %138, %123, %139 : vector<16x32xi1>, vector<16x32xf32>
    %cst_62 = arith.constant dense<0xFF800000> : vector<32xf32>
    %141 = vector.multi_reduction <maximumf>, %140, %cst_62 [0] : vector<16x32xf32> to vector<32xf32>
    %142 = vector.shape_cast %141 : vector<32xf32> to vector<1x32xf32>
    %c8_i32_63 = arith.constant 8 : i32
    %143 = vector.broadcast %c8_i32_63 : i32 to vector<16x32xi32>
    %144 = arith.cmpi sge, %124, %143 : vector<16x32xi32>
    %c12_i32_64 = arith.constant 12 : i32
    %145 = vector.broadcast %c12_i32_64 : i32 to vector<16x32xi32>
    %146 = arith.cmpi slt, %124, %145 : vector<16x32xi32>
    %147 = arith.andi %144, %146 : vector<16x32xi1>
    %cst_65 = arith.constant -3.40282347E+38 : f32
    %148 = vector.broadcast %cst_65 : f32 to vector<16x32xf32>
    %149 = arith.select %147, %123, %148 : vector<16x32xi1>, vector<16x32xf32>
    %cst_66 = arith.constant dense<0xFF800000> : vector<32xf32>
    %150 = vector.multi_reduction <maximumf>, %149, %cst_66 [0] : vector<16x32xf32> to vector<32xf32>
    %151 = vector.shape_cast %150 : vector<32xf32> to vector<1x32xf32>
    %c12_i32_67 = arith.constant 12 : i32
    %152 = vector.broadcast %c12_i32_67 : i32 to vector<16x32xi32>
    %153 = arith.cmpi sge, %124, %152 : vector<16x32xi32>
    %c16_i32_68 = arith.constant 16 : i32
    %154 = vector.broadcast %c16_i32_68 : i32 to vector<16x32xi32>
    %155 = arith.cmpi slt, %124, %154 : vector<16x32xi32>
    %156 = arith.andi %153, %155 : vector<16x32xi1>
    %cst_69 = arith.constant -3.40282347E+38 : f32
    %157 = vector.broadcast %cst_69 : f32 to vector<16x32xf32>
    %158 = arith.select %156, %123, %157 : vector<16x32xi1>, vector<16x32xf32>
    %cst_70 = arith.constant dense<0xFF800000> : vector<32xf32>
    %159 = vector.multi_reduction <maximumf>, %158, %cst_70 [0] : vector<16x32xf32> to vector<32xf32>
    %160 = vector.shape_cast %159 : vector<32xf32> to vector<1x32xf32>
    %161 = tpu.concatenate %133, %142, %151, %160 in 0 : vector<1x32xf32>, vector<1x32xf32>, vector<1x32xf32>, vector<1x32xf32> -> vector<4x32xf32>
    %162 = arith.addf %86, %161 : vector<4x32xf32>
    %c1 = arith.constant 1 : index
    %c0_71 = arith.constant 0 : index
    %c0_72 = arith.constant 0 : index
    %163 = vector.load %arg4[%c1, %c0_71, %c0_72] : memref<4x32x32xf32, #tpu.memory_space<vmem>>, vector<1x32x32xf32>
    %164 = vector.shape_cast %163 : vector<1x32x32xf32> to vector<32x32xf32>
    %c1_73 = arith.constant 1 : index
    %c0_74 = arith.constant 0 : index
    %c0_75 = arith.constant 0 : index
    %165 = vector.load %arg5[%c1_73, %c0_74, %c0_75] : memref<4x1x32xf32, #tpu.memory_space<vmem>>, vector<1x1x32xf32>
    %166 = vector.shape_cast %165 : vector<1x1x32xf32> to vector<1x32xf32>
    %cst_76 = arith.constant dense<0.000000e+00> : vector<4x32xf32>
    %167 = tpu.matmul %162, %164, %cst_76 {dimension_numbers = #tpu.dot_dimension_numbers<[1], [0], [0], [1], [0, 0, 1, 1], [], []>} : vector<4x32xf32>, vector<32x32xf32>, vector<4x32xf32> -> vector<4x32xf32>
    %cst_77 = arith.constant dense<0.000000e+00> : vector<4x32xf32>
    %168 = tpu.matmul %3, %167, %cst_77 {dimension_numbers = #tpu.dot_dimension_numbers<[1], [0], [0], [1], [0, 0, 1, 1], [], []>} : vector<4x4xf32>, vector<4x32xf32>, vector<4x32xf32> -> vector<4x32xf32>
    %169 = vector.broadcast %166 : vector<1x32xf32> to vector<4x32xf32>
    %170 = arith.addf %168, %169 : vector<4x32xf32>
    %171 = vector.shape_cast %170 : vector<4x32xf32> to vector<1x4x32xf32>
    %cst_78 = arith.constant dense<0.000000e+00> : vector<1xf32>
    %172 = vector.multi_reduction <add>, %171, %cst_78 [1, 2] : vector<1x4x32xf32> to vector<1xf32>
    %173 = vector.shape_cast %172 : vector<1xf32> to vector<1x1x1xf32>
    %174 = vector.extract %173[0, 0, 0] : f32 from vector<1x1x1xf32>
    %175 = arith.mulf %170, %170 : vector<4x32xf32>
    %176 = vector.shape_cast %175 : vector<4x32xf32> to vector<1x4x32xf32>
    %cst_79 = arith.constant dense<0.000000e+00> : vector<1xf32>
    %177 = vector.multi_reduction <add>, %176, %cst_79 [1, 2] : vector<1x4x32xf32> to vector<1xf32>
    %178 = vector.shape_cast %177 : vector<1xf32> to vector<1x1x1xf32>
    %179 = vector.extract %178[0, 0, 0] : f32 from vector<1x1x1xf32>
    %cst_80 = arith.constant 1.280000e+02 : f32
    %180 = arith.divf %174, %cst_80 : f32
    %cst_81 = arith.constant 1.280000e+02 : f32
    %181 = arith.mulf %cst_81, %180 : f32
    %182 = arith.mulf %181, %180 : f32
    %183 = arith.subf %179, %182 : f32
    %cst_82 = arith.constant 1.270000e+02 : f32
    %184 = arith.divf %183, %cst_82 : f32
    %cst_83 = arith.constant 0.000000e+00 : f32
    %185 = arith.maximumf %184, %cst_83 : f32
    %186 = vector.broadcast %180 : f32 to vector<4x32xf32>
    %187 = arith.subf %170, %186 : vector<4x32xf32>
    %188 = math.sqrt %185 : f32
    %cst_84 = arith.constant 9.99999974E-6 : f32
    %189 = arith.addf %188, %cst_84 : f32
    %190 = vector.broadcast %189 : f32 to vector<4x32xf32>
    %191 = arith.divf %187, %190 : vector<4x32xf32>
    %cst_85 = arith.constant 0.000000e+00 : f32
    %192 = vector.broadcast %cst_85 : f32 to vector<4x32xf32>
    %193 = arith.cmpf ogt, %191, %192 : vector<4x32xf32>
    %cst_86 = arith.constant 0.000000e+00 : f32
    %194 = vector.broadcast %cst_86 : f32 to vector<4x32xf32>
    %195 = arith.minimumf %191, %194 : vector<4x32xf32>
    %196 = math.exp %195 : vector<4x32xf32>
    %cst_87 = arith.constant 1.000000e+00 : f32
    %197 = vector.broadcast %cst_87 : f32 to vector<4x32xf32>
    %198 = arith.subf %196, %197 : vector<4x32xf32>
    %199 = arith.select %193, %191, %198 : vector<4x32xi1>, vector<4x32xf32>
    %c1_88 = arith.constant 1 : index
    %c0_89 = arith.constant 0 : index
    %c0_90 = arith.constant 0 : index
    %200 = vector.load %arg2[%c1_88, %c0_89, %c0_90] : memref<4x32x32xf32, #tpu.memory_space<vmem>>, vector<1x32x32xf32>
    %201 = vector.shape_cast %200 : vector<1x32x32xf32> to vector<32x32xf32>
    %c1_91 = arith.constant 1 : index
    %c0_92 = arith.constant 0 : index
    %c0_93 = arith.constant 0 : index
    %202 = vector.load %arg3[%c1_91, %c0_92, %c0_93] : memref<4x1x32xf32, #tpu.memory_space<vmem>>, vector<1x1x32xf32>
    %203 = vector.shape_cast %202 : vector<1x1x32xf32> to vector<1x32xf32>
    %cst_94 = arith.constant dense<0.000000e+00> : vector<16x32xf32>
    %204 = tpu.matmul %123, %201, %cst_94 {dimension_numbers = #tpu.dot_dimension_numbers<[1], [0], [0], [1], [0, 0, 1, 1], [], []>} : vector<16x32xf32>, vector<32x32xf32>, vector<16x32xf32> -> vector<16x32xf32>
    %cst_95 = arith.constant dense<0.000000e+00> : vector<16x32xf32>
    %205 = tpu.matmul %0, %204, %cst_95 {dimension_numbers = #tpu.dot_dimension_numbers<[1], [0], [0], [1], [0, 0, 1, 1], [], []>} : vector<16x16xf32>, vector<16x32xf32>, vector<16x32xf32> -> vector<16x32xf32>
    %206 = vector.broadcast %203 : vector<1x32xf32> to vector<16x32xf32>
    %207 = arith.addf %205, %206 : vector<16x32xf32>
    %208 = vector.shape_cast %207 : vector<16x32xf32> to vector<1x16x32xf32>
    %cst_96 = arith.constant dense<0.000000e+00> : vector<1xf32>
    %209 = vector.multi_reduction <add>, %208, %cst_96 [1, 2] : vector<1x16x32xf32> to vector<1xf32>
    %210 = vector.shape_cast %209 : vector<1xf32> to vector<1x1x1xf32>
    %211 = vector.extract %210[0, 0, 0] : f32 from vector<1x1x1xf32>
    %212 = arith.mulf %207, %207 : vector<16x32xf32>
    %213 = vector.shape_cast %212 : vector<16x32xf32> to vector<1x16x32xf32>
    %cst_97 = arith.constant dense<0.000000e+00> : vector<1xf32>
    %214 = vector.multi_reduction <add>, %213, %cst_97 [1, 2] : vector<1x16x32xf32> to vector<1xf32>
    %215 = vector.shape_cast %214 : vector<1xf32> to vector<1x1x1xf32>
    %216 = vector.extract %215[0, 0, 0] : f32 from vector<1x1x1xf32>
    %cst_98 = arith.constant 5.120000e+02 : f32
    %217 = arith.divf %211, %cst_98 : f32
    %cst_99 = arith.constant 5.120000e+02 : f32
    %218 = arith.mulf %cst_99, %217 : f32
    %219 = arith.mulf %218, %217 : f32
    %220 = arith.subf %216, %219 : f32
    %cst_100 = arith.constant 5.110000e+02 : f32
    %221 = arith.divf %220, %cst_100 : f32
    %cst_101 = arith.constant 0.000000e+00 : f32
    %222 = arith.maximumf %221, %cst_101 : f32
    %223 = vector.broadcast %217 : f32 to vector<16x32xf32>
    %224 = arith.subf %207, %223 : vector<16x32xf32>
    %225 = math.sqrt %222 : f32
    %cst_102 = arith.constant 9.99999974E-6 : f32
    %226 = arith.addf %225, %cst_102 : f32
    %227 = vector.broadcast %226 : f32 to vector<16x32xf32>
    %228 = arith.divf %224, %227 : vector<16x32xf32>
    %cst_103 = arith.constant 0.000000e+00 : f32
    %229 = vector.broadcast %cst_103 : f32 to vector<16x32xf32>
    %230 = arith.cmpf ogt, %228, %229 : vector<16x32xf32>
    %cst_104 = arith.constant 0.000000e+00 : f32
    %231 = vector.broadcast %cst_104 : f32 to vector<16x32xf32>
    %232 = arith.minimumf %228, %231 : vector<16x32xf32>
    %233 = math.exp %232 : vector<16x32xf32>
    %cst_105 = arith.constant 1.000000e+00 : f32
    %234 = vector.broadcast %cst_105 : f32 to vector<16x32xf32>
    %235 = arith.subf %233, %234 : vector<16x32xf32>
    %236 = arith.select %230, %228, %235 : vector<16x32xi1>, vector<16x32xf32>
    %237 = tpu.iota {dimensions = array<i32: 0>} : vector<16x32xi32>
    %c0_i32_106 = arith.constant 0 : i32
    %238 = vector.broadcast %c0_i32_106 : i32 to vector<16x32xi32>
    %239 = arith.cmpi sge, %237, %238 : vector<16x32xi32>
    %c4_i32_107 = arith.constant 4 : i32
    %240 = vector.broadcast %c4_i32_107 : i32 to vector<16x32xi32>
    %241 = arith.cmpi slt, %237, %240 : vector<16x32xi32>
    %242 = arith.andi %239, %241 : vector<16x32xi1>
    %cst_108 = arith.constant -3.40282347E+38 : f32
    %243 = vector.broadcast %cst_108 : f32 to vector<16x32xf32>
    %244 = arith.select %242, %236, %243 : vector<16x32xi1>, vector<16x32xf32>
    %cst_109 = arith.constant dense<0xFF800000> : vector<32xf32>
    %245 = vector.multi_reduction <maximumf>, %244, %cst_109 [0] : vector<16x32xf32> to vector<32xf32>
    %246 = vector.shape_cast %245 : vector<32xf32> to vector<1x32xf32>
    %c4_i32_110 = arith.constant 4 : i32
    %247 = vector.broadcast %c4_i32_110 : i32 to vector<16x32xi32>
    %248 = arith.cmpi sge, %237, %247 : vector<16x32xi32>
    %c8_i32_111 = arith.constant 8 : i32
    %249 = vector.broadcast %c8_i32_111 : i32 to vector<16x32xi32>
    %250 = arith.cmpi slt, %237, %249 : vector<16x32xi32>
    %251 = arith.andi %248, %250 : vector<16x32xi1>
    %cst_112 = arith.constant -3.40282347E+38 : f32
    %252 = vector.broadcast %cst_112 : f32 to vector<16x32xf32>
    %253 = arith.select %251, %236, %252 : vector<16x32xi1>, vector<16x32xf32>
    %cst_113 = arith.constant dense<0xFF800000> : vector<32xf32>
    %254 = vector.multi_reduction <maximumf>, %253, %cst_113 [0] : vector<16x32xf32> to vector<32xf32>
    %255 = vector.shape_cast %254 : vector<32xf32> to vector<1x32xf32>
    %c8_i32_114 = arith.constant 8 : i32
    %256 = vector.broadcast %c8_i32_114 : i32 to vector<16x32xi32>
    %257 = arith.cmpi sge, %237, %256 : vector<16x32xi32>
    %c12_i32_115 = arith.constant 12 : i32
    %258 = vector.broadcast %c12_i32_115 : i32 to vector<16x32xi32>
    %259 = arith.cmpi slt, %237, %258 : vector<16x32xi32>
    %260 = arith.andi %257, %259 : vector<16x32xi1>
    %cst_116 = arith.constant -3.40282347E+38 : f32
    %261 = vector.broadcast %cst_116 : f32 to vector<16x32xf32>
    %262 = arith.select %260, %236, %261 : vector<16x32xi1>, vector<16x32xf32>
    %cst_117 = arith.constant dense<0xFF800000> : vector<32xf32>
    %263 = vector.multi_reduction <maximumf>, %262, %cst_117 [0] : vector<16x32xf32> to vector<32xf32>
    %264 = vector.shape_cast %263 : vector<32xf32> to vector<1x32xf32>
    %c12_i32_118 = arith.constant 12 : i32
    %265 = vector.broadcast %c12_i32_118 : i32 to vector<16x32xi32>
    %266 = arith.cmpi sge, %237, %265 : vector<16x32xi32>
    %c16_i32_119 = arith.constant 16 : i32
    %267 = vector.broadcast %c16_i32_119 : i32 to vector<16x32xi32>
    %268 = arith.cmpi slt, %237, %267 : vector<16x32xi32>
    %269 = arith.andi %266, %268 : vector<16x32xi1>
    %cst_120 = arith.constant -3.40282347E+38 : f32
    %270 = vector.broadcast %cst_120 : f32 to vector<16x32xf32>
    %271 = arith.select %269, %236, %270 : vector<16x32xi1>, vector<16x32xf32>
    %cst_121 = arith.constant dense<0xFF800000> : vector<32xf32>
    %272 = vector.multi_reduction <maximumf>, %271, %cst_121 [0] : vector<16x32xf32> to vector<32xf32>
    %273 = vector.shape_cast %272 : vector<32xf32> to vector<1x32xf32>
    %274 = tpu.concatenate %246, %255, %264, %273 in 0 : vector<1x32xf32>, vector<1x32xf32>, vector<1x32xf32>, vector<1x32xf32> -> vector<4x32xf32>
    %275 = arith.addf %199, %274 : vector<4x32xf32>
    %c2 = arith.constant 2 : index
    %c0_122 = arith.constant 0 : index
    %c0_123 = arith.constant 0 : index
    %276 = vector.load %arg4[%c2, %c0_122, %c0_123] : memref<4x32x32xf32, #tpu.memory_space<vmem>>, vector<1x32x32xf32>
    %277 = vector.shape_cast %276 : vector<1x32x32xf32> to vector<32x32xf32>
    %c2_124 = arith.constant 2 : index
    %c0_125 = arith.constant 0 : index
    %c0_126 = arith.constant 0 : index
    %278 = vector.load %arg5[%c2_124, %c0_125, %c0_126] : memref<4x1x32xf32, #tpu.memory_space<vmem>>, vector<1x1x32xf32>
    %279 = vector.shape_cast %278 : vector<1x1x32xf32> to vector<1x32xf32>
    %cst_127 = arith.constant dense<0.000000e+00> : vector<4x32xf32>
    %280 = tpu.matmul %275, %277, %cst_127 {dimension_numbers = #tpu.dot_dimension_numbers<[1], [0], [0], [1], [0, 0, 1, 1], [], []>} : vector<4x32xf32>, vector<32x32xf32>, vector<4x32xf32> -> vector<4x32xf32>
    %cst_128 = arith.constant dense<0.000000e+00> : vector<4x32xf32>
    %281 = tpu.matmul %3, %280, %cst_128 {dimension_numbers = #tpu.dot_dimension_numbers<[1], [0], [0], [1], [0, 0, 1, 1], [], []>} : vector<4x4xf32>, vector<4x32xf32>, vector<4x32xf32> -> vector<4x32xf32>
    %282 = vector.broadcast %279 : vector<1x32xf32> to vector<4x32xf32>
    %283 = arith.addf %281, %282 : vector<4x32xf32>
    %284 = vector.shape_cast %283 : vector<4x32xf32> to vector<1x4x32xf32>
    %cst_129 = arith.constant dense<0.000000e+00> : vector<1xf32>
    %285 = vector.multi_reduction <add>, %284, %cst_129 [1, 2] : vector<1x4x32xf32> to vector<1xf32>
    %286 = vector.shape_cast %285 : vector<1xf32> to vector<1x1x1xf32>
    %287 = vector.extract %286[0, 0, 0] : f32 from vector<1x1x1xf32>
    %288 = arith.mulf %283, %283 : vector<4x32xf32>
    %289 = vector.shape_cast %288 : vector<4x32xf32> to vector<1x4x32xf32>
    %cst_130 = arith.constant dense<0.000000e+00> : vector<1xf32>
    %290 = vector.multi_reduction <add>, %289, %cst_130 [1, 2] : vector<1x4x32xf32> to vector<1xf32>
    %291 = vector.shape_cast %290 : vector<1xf32> to vector<1x1x1xf32>
    %292 = vector.extract %291[0, 0, 0] : f32 from vector<1x1x1xf32>
    %cst_131 = arith.constant 1.280000e+02 : f32
    %293 = arith.divf %287, %cst_131 : f32
    %cst_132 = arith.constant 1.280000e+02 : f32
    %294 = arith.mulf %cst_132, %293 : f32
    %295 = arith.mulf %294, %293 : f32
    %296 = arith.subf %292, %295 : f32
    %cst_133 = arith.constant 1.270000e+02 : f32
    %297 = arith.divf %296, %cst_133 : f32
    %cst_134 = arith.constant 0.000000e+00 : f32
    %298 = arith.maximumf %297, %cst_134 : f32
    %299 = vector.broadcast %293 : f32 to vector<4x32xf32>
    %300 = arith.subf %283, %299 : vector<4x32xf32>
    %301 = math.sqrt %298 : f32
    %cst_135 = arith.constant 9.99999974E-6 : f32
    %302 = arith.addf %301, %cst_135 : f32
    %303 = vector.broadcast %302 : f32 to vector<4x32xf32>
    %304 = arith.divf %300, %303 : vector<4x32xf32>
    %cst_136 = arith.constant 0.000000e+00 : f32
    %305 = vector.broadcast %cst_136 : f32 to vector<4x32xf32>
    %306 = arith.cmpf ogt, %304, %305 : vector<4x32xf32>
    %cst_137 = arith.constant 0.000000e+00 : f32
    %307 = vector.broadcast %cst_137 : f32 to vector<4x32xf32>
    %308 = arith.minimumf %304, %307 : vector<4x32xf32>
    %309 = math.exp %308 : vector<4x32xf32>
    %cst_138 = arith.constant 1.000000e+00 : f32
    %310 = vector.broadcast %cst_138 : f32 to vector<4x32xf32>
    %311 = arith.subf %309, %310 : vector<4x32xf32>
    %312 = arith.select %306, %304, %311 : vector<4x32xi1>, vector<4x32xf32>
    %c2_139 = arith.constant 2 : index
    %c0_140 = arith.constant 0 : index
    %c0_141 = arith.constant 0 : index
    %313 = vector.load %arg2[%c2_139, %c0_140, %c0_141] : memref<4x32x32xf32, #tpu.memory_space<vmem>>, vector<1x32x32xf32>
    %314 = vector.shape_cast %313 : vector<1x32x32xf32> to vector<32x32xf32>
    %c2_142 = arith.constant 2 : index
    %c0_143 = arith.constant 0 : index
    %c0_144 = arith.constant 0 : index
    %315 = vector.load %arg3[%c2_142, %c0_143, %c0_144] : memref<4x1x32xf32, #tpu.memory_space<vmem>>, vector<1x1x32xf32>
    %316 = vector.shape_cast %315 : vector<1x1x32xf32> to vector<1x32xf32>
    %cst_145 = arith.constant dense<0.000000e+00> : vector<16x32xf32>
    %317 = tpu.matmul %236, %314, %cst_145 {dimension_numbers = #tpu.dot_dimension_numbers<[1], [0], [0], [1], [0, 0, 1, 1], [], []>} : vector<16x32xf32>, vector<32x32xf32>, vector<16x32xf32> -> vector<16x32xf32>
    %cst_146 = arith.constant dense<0.000000e+00> : vector<16x32xf32>
    %318 = tpu.matmul %0, %317, %cst_146 {dimension_numbers = #tpu.dot_dimension_numbers<[1], [0], [0], [1], [0, 0, 1, 1], [], []>} : vector<16x16xf32>, vector<16x32xf32>, vector<16x32xf32> -> vector<16x32xf32>
    %319 = vector.broadcast %316 : vector<1x32xf32> to vector<16x32xf32>
    %320 = arith.addf %318, %319 : vector<16x32xf32>
    %321 = vector.shape_cast %320 : vector<16x32xf32> to vector<1x16x32xf32>
    %cst_147 = arith.constant dense<0.000000e+00> : vector<1xf32>
    %322 = vector.multi_reduction <add>, %321, %cst_147 [1, 2] : vector<1x16x32xf32> to vector<1xf32>
    %323 = vector.shape_cast %322 : vector<1xf32> to vector<1x1x1xf32>
    %324 = vector.extract %323[0, 0, 0] : f32 from vector<1x1x1xf32>
    %325 = arith.mulf %320, %320 : vector<16x32xf32>
    %326 = vector.shape_cast %325 : vector<16x32xf32> to vector<1x16x32xf32>
    %cst_148 = arith.constant dense<0.000000e+00> : vector<1xf32>
    %327 = vector.multi_reduction <add>, %326, %cst_148 [1, 2] : vector<1x16x32xf32> to vector<1xf32>
    %328 = vector.shape_cast %327 : vector<1xf32> to vector<1x1x1xf32>
    %329 = vector.extract %328[0, 0, 0] : f32 from vector<1x1x1xf32>
    %cst_149 = arith.constant 5.120000e+02 : f32
    %330 = arith.divf %324, %cst_149 : f32
    %cst_150 = arith.constant 5.120000e+02 : f32
    %331 = arith.mulf %cst_150, %330 : f32
    %332 = arith.mulf %331, %330 : f32
    %333 = arith.subf %329, %332 : f32
    %cst_151 = arith.constant 5.110000e+02 : f32
    %334 = arith.divf %333, %cst_151 : f32
    %cst_152 = arith.constant 0.000000e+00 : f32
    %335 = arith.maximumf %334, %cst_152 : f32
    %336 = vector.broadcast %330 : f32 to vector<16x32xf32>
    %337 = arith.subf %320, %336 : vector<16x32xf32>
    %338 = math.sqrt %335 : f32
    %cst_153 = arith.constant 9.99999974E-6 : f32
    %339 = arith.addf %338, %cst_153 : f32
    %340 = vector.broadcast %339 : f32 to vector<16x32xf32>
    %341 = arith.divf %337, %340 : vector<16x32xf32>
    %cst_154 = arith.constant 0.000000e+00 : f32
    %342 = vector.broadcast %cst_154 : f32 to vector<16x32xf32>
    %343 = arith.cmpf ogt, %341, %342 : vector<16x32xf32>
    %cst_155 = arith.constant 0.000000e+00 : f32
    %344 = vector.broadcast %cst_155 : f32 to vector<16x32xf32>
    %345 = arith.minimumf %341, %344 : vector<16x32xf32>
    %346 = math.exp %345 : vector<16x32xf32>
    %cst_156 = arith.constant 1.000000e+00 : f32
    %347 = vector.broadcast %cst_156 : f32 to vector<16x32xf32>
    %348 = arith.subf %346, %347 : vector<16x32xf32>
    %349 = arith.select %343, %341, %348 : vector<16x32xi1>, vector<16x32xf32>
    %350 = tpu.iota {dimensions = array<i32: 0>} : vector<16x32xi32>
    %c0_i32_157 = arith.constant 0 : i32
    %351 = vector.broadcast %c0_i32_157 : i32 to vector<16x32xi32>
    %352 = arith.cmpi sge, %350, %351 : vector<16x32xi32>
    %c4_i32_158 = arith.constant 4 : i32
    %353 = vector.broadcast %c4_i32_158 : i32 to vector<16x32xi32>
    %354 = arith.cmpi slt, %350, %353 : vector<16x32xi32>
    %355 = arith.andi %352, %354 : vector<16x32xi1>
    %cst_159 = arith.constant -3.40282347E+38 : f32
    %356 = vector.broadcast %cst_159 : f32 to vector<16x32xf32>
    %357 = arith.select %355, %349, %356 : vector<16x32xi1>, vector<16x32xf32>
    %cst_160 = arith.constant dense<0xFF800000> : vector<32xf32>
    %358 = vector.multi_reduction <maximumf>, %357, %cst_160 [0] : vector<16x32xf32> to vector<32xf32>
    %359 = vector.shape_cast %358 : vector<32xf32> to vector<1x32xf32>
    %c4_i32_161 = arith.constant 4 : i32
    %360 = vector.broadcast %c4_i32_161 : i32 to vector<16x32xi32>
    %361 = arith.cmpi sge, %350, %360 : vector<16x32xi32>
    %c8_i32_162 = arith.constant 8 : i32
    %362 = vector.broadcast %c8_i32_162 : i32 to vector<16x32xi32>
    %363 = arith.cmpi slt, %350, %362 : vector<16x32xi32>
    %364 = arith.andi %361, %363 : vector<16x32xi1>
    %cst_163 = arith.constant -3.40282347E+38 : f32
    %365 = vector.broadcast %cst_163 : f32 to vector<16x32xf32>
    %366 = arith.select %364, %349, %365 : vector<16x32xi1>, vector<16x32xf32>
    %cst_164 = arith.constant dense<0xFF800000> : vector<32xf32>
    %367 = vector.multi_reduction <maximumf>, %366, %cst_164 [0] : vector<16x32xf32> to vector<32xf32>
    %368 = vector.shape_cast %367 : vector<32xf32> to vector<1x32xf32>
    %c8_i32_165 = arith.constant 8 : i32
    %369 = vector.broadcast %c8_i32_165 : i32 to vector<16x32xi32>
    %370 = arith.cmpi sge, %350, %369 : vector<16x32xi32>
    %c12_i32_166 = arith.constant 12 : i32
    %371 = vector.broadcast %c12_i32_166 : i32 to vector<16x32xi32>
    %372 = arith.cmpi slt, %350, %371 : vector<16x32xi32>
    %373 = arith.andi %370, %372 : vector<16x32xi1>
    %cst_167 = arith.constant -3.40282347E+38 : f32
    %374 = vector.broadcast %cst_167 : f32 to vector<16x32xf32>
    %375 = arith.select %373, %349, %374 : vector<16x32xi1>, vector<16x32xf32>
    %cst_168 = arith.constant dense<0xFF800000> : vector<32xf32>
    %376 = vector.multi_reduction <maximumf>, %375, %cst_168 [0] : vector<16x32xf32> to vector<32xf32>
    %377 = vector.shape_cast %376 : vector<32xf32> to vector<1x32xf32>
    %c12_i32_169 = arith.constant 12 : i32
    %378 = vector.broadcast %c12_i32_169 : i32 to vector<16x32xi32>
    %379 = arith.cmpi sge, %350, %378 : vector<16x32xi32>
    %c16_i32_170 = arith.constant 16 : i32
    %380 = vector.broadcast %c16_i32_170 : i32 to vector<16x32xi32>
    %381 = arith.cmpi slt, %350, %380 : vector<16x32xi32>
    %382 = arith.andi %379, %381 : vector<16x32xi1>
    %cst_171 = arith.constant -3.40282347E+38 : f32
    %383 = vector.broadcast %cst_171 : f32 to vector<16x32xf32>
    %384 = arith.select %382, %349, %383 : vector<16x32xi1>, vector<16x32xf32>
    %cst_172 = arith.constant dense<0xFF800000> : vector<32xf32>
    %385 = vector.multi_reduction <maximumf>, %384, %cst_172 [0] : vector<16x32xf32> to vector<32xf32>
    %386 = vector.shape_cast %385 : vector<32xf32> to vector<1x32xf32>
    %387 = tpu.concatenate %359, %368, %377, %386 in 0 : vector<1x32xf32>, vector<1x32xf32>, vector<1x32xf32>, vector<1x32xf32> -> vector<4x32xf32>
    %388 = arith.addf %312, %387 : vector<4x32xf32>
    %c3 = arith.constant 3 : index
    %c0_173 = arith.constant 0 : index
    %c0_174 = arith.constant 0 : index
    %389 = vector.load %arg4[%c3, %c0_173, %c0_174] : memref<4x32x32xf32, #tpu.memory_space<vmem>>, vector<1x32x32xf32>
    %390 = vector.shape_cast %389 : vector<1x32x32xf32> to vector<32x32xf32>
    %c3_175 = arith.constant 3 : index
    %c0_176 = arith.constant 0 : index
    %c0_177 = arith.constant 0 : index
    %391 = vector.load %arg5[%c3_175, %c0_176, %c0_177] : memref<4x1x32xf32, #tpu.memory_space<vmem>>, vector<1x1x32xf32>
    %392 = vector.shape_cast %391 : vector<1x1x32xf32> to vector<1x32xf32>
    %cst_178 = arith.constant dense<0.000000e+00> : vector<4x32xf32>
    %393 = tpu.matmul %388, %390, %cst_178 {dimension_numbers = #tpu.dot_dimension_numbers<[1], [0], [0], [1], [0, 0, 1, 1], [], []>} : vector<4x32xf32>, vector<32x32xf32>, vector<4x32xf32> -> vector<4x32xf32>
    %cst_179 = arith.constant dense<0.000000e+00> : vector<4x32xf32>
    %394 = tpu.matmul %3, %393, %cst_179 {dimension_numbers = #tpu.dot_dimension_numbers<[1], [0], [0], [1], [0, 0, 1, 1], [], []>} : vector<4x4xf32>, vector<4x32xf32>, vector<4x32xf32> -> vector<4x32xf32>
    %395 = vector.broadcast %392 : vector<1x32xf32> to vector<4x32xf32>
    %396 = arith.addf %394, %395 : vector<4x32xf32>
    %c3_180 = arith.constant 3 : index
    %c0_181 = arith.constant 0 : index
    %c0_182 = arith.constant 0 : index
    %397 = vector.load %arg2[%c3_180, %c0_181, %c0_182] : memref<4x32x32xf32, #tpu.memory_space<vmem>>, vector<1x32x32xf32>
    %398 = vector.shape_cast %397 : vector<1x32x32xf32> to vector<32x32xf32>
    %c3_183 = arith.constant 3 : index
    %c0_184 = arith.constant 0 : index
    %c0_185 = arith.constant 0 : index
    %399 = vector.load %arg3[%c3_183, %c0_184, %c0_185] : memref<4x1x32xf32, #tpu.memory_space<vmem>>, vector<1x1x32xf32>
    %400 = vector.shape_cast %399 : vector<1x1x32xf32> to vector<1x32xf32>
    %cst_186 = arith.constant dense<0.000000e+00> : vector<16x32xf32>
    %401 = tpu.matmul %349, %398, %cst_186 {dimension_numbers = #tpu.dot_dimension_numbers<[1], [0], [0], [1], [0, 0, 1, 1], [], []>} : vector<16x32xf32>, vector<32x32xf32>, vector<16x32xf32> -> vector<16x32xf32>
    %cst_187 = arith.constant dense<0.000000e+00> : vector<16x32xf32>
    %402 = tpu.matmul %0, %401, %cst_187 {dimension_numbers = #tpu.dot_dimension_numbers<[1], [0], [0], [1], [0, 0, 1, 1], [], []>} : vector<16x16xf32>, vector<16x32xf32>, vector<16x32xf32> -> vector<16x32xf32>
    %403 = vector.broadcast %400 : vector<1x32xf32> to vector<16x32xf32>
    %404 = arith.addf %402, %403 : vector<16x32xf32>
    %405 = tpu.iota {dimensions = array<i32: 0>} : vector<16x32xi32>
    %c0_i32_188 = arith.constant 0 : i32
    %406 = vector.broadcast %c0_i32_188 : i32 to vector<16x32xi32>
    %407 = arith.cmpi sge, %405, %406 : vector<16x32xi32>
    %c4_i32_189 = arith.constant 4 : i32
    %408 = vector.broadcast %c4_i32_189 : i32 to vector<16x32xi32>
    %409 = arith.cmpi slt, %405, %408 : vector<16x32xi32>
    %410 = arith.andi %407, %409 : vector<16x32xi1>
    %cst_190 = arith.constant -3.40282347E+38 : f32
    %411 = vector.broadcast %cst_190 : f32 to vector<16x32xf32>
    %412 = arith.select %410, %404, %411 : vector<16x32xi1>, vector<16x32xf32>
    %cst_191 = arith.constant dense<0xFF800000> : vector<32xf32>
    %413 = vector.multi_reduction <maximumf>, %412, %cst_191 [0] : vector<16x32xf32> to vector<32xf32>
    %414 = vector.shape_cast %413 : vector<32xf32> to vector<1x32xf32>
    %c4_i32_192 = arith.constant 4 : i32
    %415 = vector.broadcast %c4_i32_192 : i32 to vector<16x32xi32>
    %416 = arith.cmpi sge, %405, %415 : vector<16x32xi32>
    %c8_i32_193 = arith.constant 8 : i32
    %417 = vector.broadcast %c8_i32_193 : i32 to vector<16x32xi32>
    %418 = arith.cmpi slt, %405, %417 : vector<16x32xi32>
    %419 = arith.andi %416, %418 : vector<16x32xi1>
    %cst_194 = arith.constant -3.40282347E+38 : f32
    %420 = vector.broadcast %cst_194 : f32 to vector<16x32xf32>
    %421 = arith.select %419, %404, %420 : vector<16x32xi1>, vector<16x32xf32>
    %cst_195 = arith.constant dense<0xFF800000> : vector<32xf32>
    %422 = vector.multi_reduction <maximumf>, %421, %cst_195 [0] : vector<16x32xf32> to vector<32xf32>
    %423 = vector.shape_cast %422 : vector<32xf32> to vector<1x32xf32>
    %c8_i32_196 = arith.constant 8 : i32
    %424 = vector.broadcast %c8_i32_196 : i32 to vector<16x32xi32>
    %425 = arith.cmpi sge, %405, %424 : vector<16x32xi32>
    %c12_i32_197 = arith.constant 12 : i32
    %426 = vector.broadcast %c12_i32_197 : i32 to vector<16x32xi32>
    %427 = arith.cmpi slt, %405, %426 : vector<16x32xi32>
    %428 = arith.andi %425, %427 : vector<16x32xi1>
    %cst_198 = arith.constant -3.40282347E+38 : f32
    %429 = vector.broadcast %cst_198 : f32 to vector<16x32xf32>
    %430 = arith.select %428, %404, %429 : vector<16x32xi1>, vector<16x32xf32>
    %cst_199 = arith.constant dense<0xFF800000> : vector<32xf32>
    %431 = vector.multi_reduction <maximumf>, %430, %cst_199 [0] : vector<16x32xf32> to vector<32xf32>
    %432 = vector.shape_cast %431 : vector<32xf32> to vector<1x32xf32>
    %c12_i32_200 = arith.constant 12 : i32
    %433 = vector.broadcast %c12_i32_200 : i32 to vector<16x32xi32>
    %434 = arith.cmpi sge, %405, %433 : vector<16x32xi32>
    %c16_i32_201 = arith.constant 16 : i32
    %435 = vector.broadcast %c16_i32_201 : i32 to vector<16x32xi32>
    %436 = arith.cmpi slt, %405, %435 : vector<16x32xi32>
    %437 = arith.andi %434, %436 : vector<16x32xi1>
    %cst_202 = arith.constant -3.40282347E+38 : f32
    %438 = vector.broadcast %cst_202 : f32 to vector<16x32xf32>
    %439 = arith.select %437, %404, %438 : vector<16x32xi1>, vector<16x32xf32>
    %cst_203 = arith.constant dense<0xFF800000> : vector<32xf32>
    %440 = vector.multi_reduction <maximumf>, %439, %cst_203 [0] : vector<16x32xf32> to vector<32xf32>
    %441 = vector.shape_cast %440 : vector<32xf32> to vector<1x32xf32>
    %442 = tpu.concatenate %414, %423, %432, %441 in 0 : vector<1x32xf32>, vector<1x32xf32>, vector<1x32xf32>, vector<1x32xf32> -> vector<4x32xf32>
    %443 = vector.broadcast %2 : f32 to vector<4x32xf32>
    %444 = arith.mulf %443, %442 : vector<4x32xf32>
    %cst_204 = arith.constant 1.000000e+00 : f32
    %445 = arith.subf %cst_204, %2 : f32
    %446 = vector.broadcast %445 : f32 to vector<4x32xf32>
    %447 = arith.mulf %446, %396 : vector<4x32xf32>
    %448 = arith.addf %444, %447 : vector<4x32xf32>
    %449 = vector.extract_strided_slice %448 {offsets = [0, 0], sizes = [4, 4], strides = [1, 1]} : vector<4x32xf32> to vector<4x4xf32>
    %cst_205 = arith.constant dense<0xFF800000> : vector<4xf32>
    %450 = vector.multi_reduction <maximumf>, %449, %cst_205 [1] : vector<4x4xf32> to vector<4xf32>
    %451 = vector.shape_cast %450 : vector<4xf32> to vector<4x1xf32>
    %452 = vector.broadcast %451 : vector<4x1xf32> to vector<4x4xf32>
    %453 = arith.subf %449, %452 : vector<4x4xf32>
    %454 = math.exp %453 : vector<4x4xf32>
    %cst_206 = arith.constant dense<0.000000e+00> : vector<4xf32>
    %455 = vector.multi_reduction <add>, %454, %cst_206 [1] : vector<4x4xf32> to vector<4xf32>
    %456 = vector.shape_cast %455 : vector<4xf32> to vector<4x1xf32>
    %457 = vector.broadcast %456 : vector<4x1xf32> to vector<4x4xf32>
    %458 = arith.divf %454, %457 : vector<4x4xf32>
    %c0_207 = arith.constant 0 : index
    %c0_208 = arith.constant 0 : index
    %459 = vector.load %arg7[%c0_207, %c0_208] : memref<4x4xf32, #tpu.memory_space<vmem>>, vector<4x4xf32>
    tpu.vector_store %arg7[%c0_207, %c0_208], %458 {strides = array<i32>} : memref<4x4xf32, #tpu.memory_space<vmem>>, vector<4x4xf32>,
    %460 = vector.extract_strided_slice %404 {offsets = [0, 0], sizes = [16, 4], strides = [1, 1]} : vector<16x32xf32> to vector<16x4xf32>
    %cst_209 = arith.constant dense<0xFF800000> : vector<16xf32>
    %461 = vector.multi_reduction <maximumf>, %460, %cst_209 [1] : vector<16x4xf32> to vector<16xf32>
    %462 = vector.shape_cast %461 : vector<16xf32> to vector<16x1xf32>
    %463 = vector.broadcast %462 : vector<16x1xf32> to vector<16x4xf32>
    %464 = arith.subf %460, %463 : vector<16x4xf32>
    %465 = math.exp %464 : vector<16x4xf32>
    %cst_210 = arith.constant dense<0.000000e+00> : vector<16xf32>
    %466 = vector.multi_reduction <add>, %465, %cst_210 [1] : vector<16x4xf32> to vector<16xf32>
    %467 = vector.shape_cast %466 : vector<16xf32> to vector<16x1xf32>
    %468 = vector.broadcast %467 : vector<16x1xf32> to vector<16x4xf32>
    %469 = arith.divf %465, %468 : vector<16x4xf32>
    %c0_211 = arith.constant 0 : index
    %c0_212 = arith.constant 0 : index
    %470 = vector.load %arg8[%c0_211, %c0_212] : memref<16x4xf32, #tpu.memory_space<vmem>>, vector<16x4xf32>
    tpu.vector_store %arg8[%c0_211, %c0_212], %469 {strides = array<i32>} : memref<16x4xf32, #tpu.memory_space<vmem>>, vector<16x4xf32>,
    return
  }
}

</mosaic_0001>

<bundles_post_ra>
// kernel: gnn_complex2_forward.1
= control target key start
LH: loop header
LB: loop body
LE: loop exit
PB: predicated region body
PF: predicated region fallthrough
CT: control target
= control target key end

     0   :  { %15 = vsyncpa [#allocation4], 0  ;;  %s3031_s0 = inlined_call_operand.vmem [shape: f32[16,16], index: 0, kind: input, shape index: {}]   ;;  %s3032_s1 = inlined_call_operand.vmem [shape: f32[16,32], index: 1, kind: input, shape index: {}]   ;;  %s3033_s2 = inlined_call_operand.hbm [shape: f32[4,32,32], index: 2, kind: input, shape index: {}]   ;;  %s3034_s3 = inlined_call_operand.vmem [shape: f32[4,1,32], index: 3, kind: input, shape index: {}]   ;;  %s3035_s4 = inlined_call_operand.hbm [shape: f32[4,32,32], index: 4, kind: input, shape index: {}]   ;;  %s3036_s5 = inlined_call_operand.vmem [shape: f32[4,1,32], index: 5, kind: input, shape index: {}]   ;;  %s3037_s6 = inlined_call_operand.<no memory space> [shape: f32[1], index: 6, kind: input, shape index: {}]   ;;  %s3038_s7 = inlined_call_operand.hbm [shape: f32[4,4], index: 7, kind: output, shape index: {0}]   ;;  %s3039_s8 = inlined_call_operand.vmem [shape: f32[16,4], index: 8, kind: output, shape index: {1}]  }
   0x1   :  { %16 = vsyncpa [#allocation7], 0 }
   0x2   :  { %17 = vsyncpa [#allocation5], 0  ;;  %s2574_s27 = smov [#allocation3]   ;;  %s2502_s9 = scalar_lea.hbm %s3033_s2, 2048 }
   0x3   :  { %s27_s28 = sshll.u32 %s2574_s27, 4  ;;  %p2503_p0 = scmp.ne.s32.totalorder %s3033_s2, %s2502_s9  ;;  %s28_s28 = int_to_ptr.vmem [resolvable:$true] %s27_s28 }
   0x4   :  { %p2506_p1 = scmp.lt.u32.totalorder %s2502_s9, %s3033_s2 }
   0x6   :  { %p2508_p2 = pnand %p2506_p1, %p2503_p0 }
   0x8   :  { %2511 = shalt.err (!%p2508_p2)
}
   0x9   :  { %s2512_s14 = scalar_lea.vmem %s28_s28, 2048  ;;  %p2517_p4 = scmp.lt.s32.totalorder %s28_s28, %s28_s28 }
   0xa   :  { %p2513_p3 = scmp.ne.s32.totalorder %s28_s28, %s2512_s14  ;;  %p2518_p5 = scmp.lt.s32.totalorder %s2512_s14, %s2512_s14 }
   0xc   :  { %p2519_p6 = por %p2518_p5, %p2517_p4 }
   0xe   :  { %p2520_p7 = pnand %p2519_p6, %p2513_p3 }
  0x10   :  { %2523 = shalt.err (!%p2520_p7)
}
  0x11   :  { %s2575_s15 = smov 128   ;;  %s2576_s16 = smov 8  }
  0x12   :  { %33 = dma.hbm_to_vmem [thread:$0]  %s3033_s2, 2048, %s28_s28, [#allocation4], %s2575_s15, %s2575_s15, %s2576_s16  }
  0x13   :  { %s2577_s19 = smov [#allocation6]   ;;  %s2524_s23 = scalar_lea.hbm %s3035_s4, 2048 }
  0x14   :  { %s41_s20 = sshll.u32 %s2577_s19, 4  ;;  %p2525_p8 = scmp.ne.s32.totalorder %s3035_s4, %s2524_s23  ;;  %s42_s20 = int_to_ptr.vmem [resolvable:$true] %s41_s20 }
  0x15   :  { %p2528_p9 = scmp.lt.u32.totalorder %s2524_s23, %s3035_s4 }
  0x17   :  { %p2530_p10 = pnand %p2528_p9, %p2525_p8 }
  0x19   :  { %2533 = shalt.err (!%p2530_p10)
}
  0x1a   :  { %s2534_s29 = scalar_lea.vmem %s42_s20, 2048  ;;  %p2539_p12 = scmp.lt.s32.totalorder %s42_s20, %s42_s20 }
  0x1b   :  { %p2535_p11 = scmp.ne.s32.totalorder %s42_s20, %s2534_s29  ;;  %p2540_p13 = scmp.lt.s32.totalorder %s2534_s29, %s2534_s29 }
  0x1d   :  { %p2541_p0 = por %p2540_p13, %p2539_p12 }
  0x1f   :  { %p2542_p1 = pnand %p2541_p0, %p2535_p11 }
  0x21   :  { %2545 = shalt.err (!%p2542_p1)
}
  0x22   :  { %47 = dma.hbm_to_vmem [thread:$0]  %s3035_s4, 2048, %s42_s20, [#allocation7], %s2575_s15, %s2575_s15, %s2576_s16  }
  0x23   :  { %2568 = dma.done.wait [#allocation4], 2048  }
  0x24   :  { %2569 = vsyncadd [#allocation4], 4294965248 }
  0x25   :  { %2570 = dma.done.wait [#allocation7], 2048  }
  0x26   :  { %2571 = vsyncadd [#allocation7], 4294965248  ;;  %v63_v0 = vlaneseq  ;;  %v2578_v1 = vmov 0.0|0.0   ;;  %vm2579_vm0 = vmmov 0   ;;  %v2580_v2 = vmov 0.0   ;;  %v146_v5 = vld [vmem:[#allocation6] sm:$0xff] }
  0x27   :  { %2327 = vmatprep.subr.bf16.mxu0 %v2578_v1  ;;  %2199 = vmatprep.mubr.msk.f32.mxu0 %vm2579_vm0, %v2580_v2  ;;  %v147_v6 = vld [vmem:[#allocation6 + $0x8] sm:$0xff]  ;;  %v148_v7 = vld [vmem:[#allocation6 + $0x10] sm:$0xff]  ;;  %vm74_vm4 = vcmask 261120   ;;  %v149_v9 = vld [vmem:[#allocation6 + $0x18] sm:$0xff]  ;;  %vm140_vm6 = vcmask 1040384   ;;  %vm142_vm7 = vcmask 1041408  }
  0x28   :  { %v2657_v3 = vshrl.u32 %v63_v0, 7  ;;  %2202 = vmatprep.subr.mxu1 %v2580_v2  ;;  %2204 = vmatprep.mubr.msk.f32.mxu1 %vm2579_vm0, %v2580_v2  ;;  %v2328_v8 = vpack.c.bf16 %v147_v6, %v146_v5  ;;  %v2672_v10 = vld [vmem:[%s3032_s1] sm:$0xff]  ;;  %v2677_v11 = vld [vmem:[%s3032_s1 + $0x8] sm:$0xff]  ;;  %v2331_v12 = vpack.c.bf16 %v149_v9, %v148_v7  ;;  %vm144_vm8 = vcmask 1042432   ;;  %v363_v54 = vld [vmem:[#allocation3 + $0x10] sm:$0xff]  ;;  %s2582_s23 = smov 0.0  }
  0x29   :  { %v361_v52 = vld [vmem:[#allocation3] sm:$0xff]  ;;  %v362_v53 = vld [vmem:[#allocation3 + $0x8] sm:$0xff]  ;;  %v364_v55 = vld [vmem:[#allocation3 + $0x18] sm:$0xff]  ;;  %vm234_vm9 = vcmask 1043456   ;;  %vm230_vm10 = vcmask 31744   ;;  %v2581_v60 = vmov 0.25  }
  0x2a   :  { %v2663_v4 = vadd.s32 8, %v2657_v3  ;;  %vm68_vm1 = vcmp.lt.s32.totalorder %v2657_v3, 4  ;;  %vm86_vm2 = vcmp.ge.s32.totalorder %v2657_v3, 4  ;;  %2329 = vmatpush3.bf16.msra.mxu0 %v2328_v8  ;;  %v2333_v56 = vpack.c.bf16 %v362_v53, %v361_v52  ;;  %v2713_v61 = vld [vmem:[%s3031_s0] sm:$0xff]  ;;  %s2584_s25 = smov [#allocation8]  }
  0x2b   :  { %v72_v13 = vsel %vm68_vm1, %v2672_v10, 0.0  ;;  %v92_v14 = vsel %vm86_vm2, %v2672_v10, 0.0  ;;  %2330 = vmatprep.subr.bf16.mxu0 %v2578_v1  ;;  %v2337_v58 = vpack.c.bf16 %v364_v55, %v363_v54  ;;  %vm453_vm11 = vcmask 130048   ;;  %v2073_v62 = vld [vmem:[%s3036_s5] ss:$0 sm:$0xff]  ;;  %s2058_s26 = sshll.u32 %s2584_s25, 4  ;;  %s2059_s26 = int_to_ptr.vmem [resolvable:$true] %s2058_s26 }
  0x2c   :  { %vm107_vm3 = vcmp.lt.s32.totalorder %v2663_v4, 12  ;;  %vm123_vm5 = vcmp.ge.s32.totalorder %v2663_v4, 12  ;;  %v75_v16 = vsel %vm74_vm4, %v72_v13, 0.0  ;;  %v94_v17 = vsel %vm74_vm4, %v92_v14, 0.0  ;;  %p2551_p3 = scmp.lt.s32.totalorder %s2059_s26, %s2059_s26 }
  0x2d   :  { %v111_v15 = vsel %vm107_vm3, %v2677_v11, 0.0  ;;  %v129_v19 = vsel %vm123_vm5, %v2677_v11, 0.0  ;;  %v78_v20 = vrot.slane %v75_v16, 4  ;;  %v97_v21 = vrot.slane %v94_v17, 4 }
  0x2e   :  { %v113_v18 = vsel %vm74_vm4, %v111_v15, 0.0  ;;  %v131_v23 = vsel %vm74_vm4, %v129_v19, 0.0  ;;  %2332 = vmatpush3.bf16.msra.mxu0 %v2331_v12  ;;  %vm308_vm12 = vcmask 257024   ;;  %v2730_v12 = vld [vmem:[%s3031_s0 + $0x8] sm:$0xff] }
  0x2f   :  { %v115_v22 = vrot.slane %v113_v18, 4  ;;  %v133_v24 = vrot.slane %v131_v23, 4  ;;  %v79_v25 = vadd.f32 %v78_v20, %v75_v16  ;;  %v98_v26 = vadd.f32 %v97_v21, %v94_v17 }
  0x31   :  { %v116_v27 = vadd.f32 %v115_v22, %v113_v18  ;;  %v134_v28 = vadd.f32 %v133_v24, %v131_v23  ;;  %v80_v29 = vrot.slane %v79_v25, 2  ;;  %v99_v30 = vrot.slane %v98_v26, 2 }
  0x33   :  { %v117_v31 = vrot.slane %v116_v27, 2  ;;  %v135_v32 = vrot.slane %v134_v28, 2  ;;  %v81_v33 = vadd.f32 %v80_v29, %v79_v25  ;;  %v100_v34 = vadd.f32 %v99_v30, %v98_v26 }
  0x35   :  { %v118_v35 = vadd.f32 %v117_v31, %v116_v27  ;;  %v136_v36 = vadd.f32 %v135_v32, %v134_v28  ;;  %v82_v37 = vrot.slane %v81_v33, 1  ;;  %v101_v38 = vrot.slane %v100_v34, 1  ;;  %v2079_v28 = vld [vmem:[%s3034_s3] ss:$0 sm:$0xff] }
  0x37   :  { %v119_v39 = vrot.slane %v118_v35, 1  ;;  %v137_v40 = vrot.slane %v136_v36, 1  ;;  %v83_v41 = vadd.f32 %v82_v37, %v81_v33  ;;  %v102_v42 = vadd.f32 %v101_v38, %v100_v34 }
  0x39   :  { %v120_v43 = vadd.f32 %v119_v39, %v118_v35  ;;  %v138_v44 = vadd.f32 %v137_v40, %v136_v36  ;;  %v85_v45 = vmul.f32 0.25, %v83_v41  ;;  %v103_v46 = vmul.f32 0.25, %v102_v42 }
  0x3b   :  { %v121_v47 = vmul.f32 0.25, %v120_v43  ;;  %v139_v48 = vmul.f32 0.25, %v138_v44  ;;  %v141_v49 = vsel %vm140_vm6, %v85_v45, %v103_v46 }
  0x3d   :  { %v143_v50 = vsel %vm142_vm7, %v141_v49, %v121_v47 }
  0x3e   :  { %v145_v51 = vsel %vm144_vm8, %v143_v50, %v139_v48 }
  0x3f   :  { %2200 = vmatmul.mubr.msk.f32.vlgmr.msra.gmra.mrb[0].mxu0 %vm74_vm4, %v145_v51 }
  0x40   :  { %2222 = vmatprep.mubr.msk.f32.mxu0 %vm453_vm11, %v2713_v61 }
 0x112   :  { %v220_v57 = vpop.f32.mrb[0].mxu0 }
 0x113   :  { %v2201_v59 = vpop.f32.mrb[1].mxu0  ;;  %2203 = vmatpush3.msk.msra.mxu1 %vm234_vm9, %v220_v57 }
 0x114   :  { %2205 = vmatmul.mubr.msk.f32.vlgmr.msra.gmra.mrb[0].mxu1 %vm230_vm10, %v2581_v60  ;;  %2334 = vmatprep.subr.bf16.mxu1 %v2333_v56 }
 0x115   :  { %2336 = vmatpush3.bf16.msra.mxu1 %v2333_v56  ;;  %2215 = vmatprep.mubr.msk.f32.mxu1 %vm74_vm4, %v2672_v10 }
 0x116   :  { %2338 = vmatprep.subr.bf16.mxu1 %v2337_v58 }
 0x119   :  { %2340 = vmatpush3.bf16.msra.mxu1 %v2337_v58 }
 0x11a   :  { %2345 = vmatprep.subr.bf16.mxu1 %v2578_v1 }
 0x11c   :  { %2216 = vmatmul.mubr.msk.f32.vlgmr.msra.gmra.mrb[2].mxu1 %vm74_vm4, %v2677_v11 }
 0x11d   :  { %2233 = vmatprep.mubr.msk.f32.mxu1 %vm2579_vm0, %v2580_v2 }
 0x1e7   :  { %v304_v63 = vpop.f32.mrb[0].mxu1 }
 0x1e8   :  { %v2720_v0 = vadd.f32 %v2073_v62, %v304_v63  ;;  %v2206_v5 = vpop.f32.mrb[1].mxu1  ;;  %v649_v62 = vld [vmem:[#allocation6 + $0x20] sm:$0xff]  ;;  %v650_v63 = vld [vmem:[#allocation6 + $0x28] sm:$0xff] }
 0x1e9   :  { %v651_v5 = vld [vmem:[#allocation6 + $0x30] sm:$0xff] }
 0x1ea   :  { %v309_v6 = vsel %vm308_vm12, %v2720_v0, 0.0  ;;  %v319_v7 = vmul.f32 %v2720_v0, %v2720_v0 }
 0x1eb   :  { %310 = vadd.xlane.f32.xlu0 %v309_v6  ;;  %v2346_v6 = vpack.c.bf16 %v650_v63, %v649_v62 }
 0x1ec   :  { %v320_v8 = vsel %vm308_vm12, %v319_v7, 0.0  ;;  %v652_v7 = vld [vmem:[#allocation6 + $0x38] sm:$0xff] }
 0x1ed   :  { %2347 = vmatpush3.bf16.msra.mxu1 %v2346_v6 }
 0x1ee   :  { %2348 = vmatprep.subr.bf16.mxu1 %v2578_v1 }
 0x1ef   :  { %321 = vadd.xlane.f32.xlu0 %v320_v8  ;;  %v2217_v9 = vpop.f32.mrb[2].mxu1  ;;  %v2349_v8 = vpack.c.bf16 %v652_v7, %v651_v5 }
 0x1f0   :  { %v438_v10 = vpop.f32.mrb[3].mxu1 }
 0x1f1   :  { %v2341_v11 = vpack.c.bf16 %v2217_v9, %v438_v10  ;;  %2350 = vmatpush3.bf16.msra.mxu1 %v2349_v8 }
 0x1f3   :  { %2342 = vmatprep.subr.bf16.mxu0 %v2341_v11 }
 0x1f4   :  { %2344 = vmatpush3.bf16.msra.mxu0 %v2341_v11 }
 0x1f5   :  { %2236 = vmatprep.subr.mxu0 %v2580_v2 }
 0x1f7   :  { %2223 = vmatmul.mubr.msk.f32.vlgmr.msra.gmra.mrb[2].mxu0 %vm453_vm11, %v2730_v12 }
 0x1f8   :  { %2238 = vmatprep.mubr.msk.f32.mxu0 %vm2579_vm0, %v2580_v2 }
 0x278   :  { %v311_v13 = vpop.xlane.xlu0 %310 }
 0x279   :  { %v312_v14 = vrot.slane %v311_v13, 4 }
 0x27b   :  { %v313_v15 = vadd.f32 %v312_v14, %v311_v13 }
 0x27c   :  { %v322_v16 = vpop.xlane.xlu0 %321 }
 0x27d   :  { %v314_v17 = vrot.slane %v313_v15, 2  ;;  %v323_v18 = vrot.slane %v322_v16, 4 }
 0x27f   :  { %v324_v19 = vadd.f32 %v323_v18, %v322_v16  ;;  %v315_v20 = vadd.f32 %v314_v17, %v313_v15 }
 0x281   :  { %v325_v21 = vrot.slane %v324_v19, 2  ;;  %v316_v22 = vrot.slane %v315_v20, 1 }
 0x283   :  { %v317_v23 = vadd.f32 %v316_v22, %v315_v20  ;;  %v326_v24 = vadd.f32 %v325_v21, %v324_v19 }
 0x285   :  { %2399 = vpush %v317_v23  ;;  %v327_v25 = vrot.slane %v326_v24, 1 }
 0x287   :  { %v328_v26 = vadd.f32 %v327_v25, %v326_v24 }
 0x289   :  { %2401 = vpush %v328_v26 }
 0x2b6   :  { %s2400_s16 = spop %2399 }
 0x2b7   :  { %s2737_s17 = smul.f32 0.0078125, %s2400_s16 }
 0x2b9   :  { %s333_s18 = smul.f32 128.0, %s2737_s17  ;;  %v340_v26 = vstv %s2737_s17 }
 0x2ba   :  { %s2402_s20 = spop %2401 }
 0x2bb   :  { %s334_s19 = smul.f32 %s333_s18, %s2737_s17 }
 0x2bd   :  { %s335_s21 = ssub.f32 %s2402_s20, %s334_s19 }
 0x2bf   :  { %s338_s22 = smul.f32 0.007874016, %s335_s21 }
 0x2c1   :  { %s339_s24 = smax.f32 %s2582_s23, %s338_s22 }
 0x2c2   :  { %v342_v27 = vstv %s339_s24 }
 0x2c3   :  { %2446 = vrsqrt.f32 %v342_v27  ;;  %vm345_vm13 = vcmp.eq.f32.partialorder %v342_v27, inf  ;;  %v348_v40 = vand.u32 2147483648, %v342_v27  ;;  %vm347_vm14 = vcmp.eq.f32.partialorder %v342_v27, 0.0 }
 0x2ca   :  { %v2224_v29 = vpop.f32.mrb[2].mxu0 }
 0x2cb   :  { %v2745_v30 = vadd.f32 %v2224_v29, %v2079_v28  ;;  %v526_v31 = vpop.f32.mrb[3].mxu0 }
 0x2cc   :  { %v2747_v32 = vadd.f32 %v2079_v28, %v526_v31  ;;  %v341_v31 = vsub.f32 %v2720_v0, %v340_v26 }
 0x2cd   :  { %v2447_v33 = vpop.eup %2446  ;;  %v536_v34 = vsel %vm74_vm4, %v2745_v30, 0.0  ;;  %v548_v35 = vmul.f32 %v2745_v30, %v2745_v30 }
 0x2ce   :  { %v535_v36 = vsel %vm74_vm4, %v2747_v32, 0.0  ;;  %v344_v37 = vmul.f32 %v2447_v33, %v342_v27  ;;  %v547_v38 = vmul.f32 %v2747_v32, %v2747_v32 }
 0x2cf   :  { %v537_v39 = vadd.f32 %v536_v34, %v535_v36  ;;  %v550_v43 = vsel %vm74_vm4, %v548_v35, 0.0 }
 0x2d0   :  { %v346_v41 = vsel %vm345_vm13, %v342_v27, %v344_v37  ;;  %v549_v42 = vsel %vm74_vm4, %v547_v38, 0.0 }
 0x2d1   :  { %538 = vadd.xlane.f32.xlu1 %v537_v39  ;;  %v349_v44 = vsel %vm347_vm14, %v348_v40, %v346_v41  ;;  %v551_v45 = vadd.f32 %v550_v43, %v549_v42  ;;  %v2583_v39 = vmov -inf  }
 0x2d2   :  { %2403 = vpush %v349_v44  ;;  %v2768_v40 = vsel %vm74_vm4, -3.4028235e+38, %v2583_v39 }
 0x2d5   :  { %552 = vadd.xlane.f32.xlu1 %v551_v45 }
 0x303   :  { %s2404_s27 = spop %2403 }
 0x304   :  { %s351_s13 = sadd.f32 1e-05, %s2404_s27 }
 0x306   :  { %v352_v17 = vstv %s351_s13 }
 0x35e   :  { %v539_v46 = vpop.xlane.xlu1 %538 }
 0x35f   :  { %v540_v47 = vrot.slane %v539_v46, 4 }
 0x361   :  { %v541_v48 = vadd.f32 %v540_v47, %v539_v46 }
 0x362   :  { %v553_v49 = vpop.xlane.xlu1 %552 }
 0x363   :  { %v542_v50 = vrot.slane %v541_v48, 2  ;;  %v554_v51 = vrot.slane %v553_v49, 4 }
 0x365   :  { %v555_v52 = vadd.f32 %v554_v51, %v553_v49  ;;  %v543_v53 = vadd.f32 %v542_v50, %v541_v48 }
 0x367   :  { %v556_v54 = vrot.slane %v555_v52, 2  ;;  %v544_v55 = vrot.slane %v543_v53, 1 }
 0x369   :  { %v545_v56 = vadd.f32 %v544_v55, %v543_v53  ;;  %v557_v57 = vadd.f32 %v556_v54, %v555_v52 }
 0x36b   :  { %2405 = vpush %v545_v56  ;;  %v558_v58 = vrot.slane %v557_v57, 1 }
 0x36d   :  { %v559_v59 = vadd.f32 %v558_v58, %v557_v57 }
 0x36f   :  { %2407 = vpush %v559_v59 }
 0x39c   :  { %s2406_s29 = spop %2405 }
 0x39d   :  { %s563_s2 = smul.f32 0.001953125, %s2406_s29 }
 0x39f   :  { %s564_s28 = smul.f32 512.0, %s563_s2  ;;  %v571_v18 = vstv %s563_s2 }
 0x3a0   :  { %s2408_s30 = spop %2407  ;;  %v572_v19 = vsub.f32 %v2747_v32, %v571_v18  ;;  %v573_v20 = vsub.f32 %v2745_v30, %v571_v18 }
 0x3a1   :  { %s565_s4 = smul.f32 %s564_s28, %s563_s2 }
 0x3a3   :  { %s566_s9 = ssub.f32 %s2408_s30, %s565_s4 }
 0x3a5   :  { %s569_s10 = smul.f32 0.0019569471, %s566_s9 }
 0x3a7   :  { %s570_s1 = smax.f32 %s2582_s23, %s569_s10 }
 0x3a8   :  { %v574_v9 = vstv %s570_s1 }
 0x3a9   :  { %2448 = vrsqrt.f32 %v574_v9  ;;  %vm577_vm15 = vcmp.eq.f32.partialorder %v574_v9, inf  ;;  %v580_v13 = vand.u32 2147483648, %v574_v9  ;;  %vm579_vm13 = vcmp.eq.f32.partialorder %v574_v9, 0.0 }
 0x3b3   :  { %v2449_v10 = vpop.eup %2448 }
 0x3b4   :  { %v576_v11 = vmul.f32 %v2449_v10, %v574_v9 }
 0x3b6   :  { %v578_v14 = vsel %vm577_vm15, %v574_v9, %v576_v11 }
 0x3b7   :  { %v581_v15 = vsel %vm579_vm13, %v580_v13, %v578_v14 }
 0x3b8   :  { %2409 = vpush %v581_v15 }
 0x3e9   :  { %s2410_s11 = spop %2409 }
 0x3ea   :  { %s583_s12 = sadd.f32 1e-05, %s2410_s11 }
 0x3ec   :  { %v584_v16 = vstv %s583_s12 }
 0x3ed   :  { %2450 = vrcp.f32 %v584_v16 }
 0x3ee   :  { %2452 = vrcp.f32 %v352_v17 }
 0x3f7   :  { %v2451_v21 = vpop.eup %2450 }
 0x3f8   :  { %v586_v22 = vmul.f32 %v2451_v21, %v572_v19  ;;  %v587_v23 = vmul.f32 %v2451_v21, %v573_v20  ;;  %v2453_v29 = vpop.eup %2452 }
 0x3f9   :  { %v354_v33 = vmul.f32 %v2453_v29, %v341_v31  ;;  %v861_v29 = vld [vmem:[#allocation3 + $0x28] sm:$0xff]  ;;  %v862_v31 = vld [vmem:[#allocation3 + $0x30] sm:$0xff] }
 0x3fa   :  { %v590_v24 = vmin.f32 %v586_v22, 0.0  ;;  %v591_v25 = vmin.f32 %v587_v23, 0.0  ;;  %vm588_vm14 = vcmp.gt.f32.partialorder %v586_v22, 0.0  ;;  %vm589_vm15 = vcmp.gt.f32.partialorder %v587_v23, 0.0 }
 0x3fb   :  { %v356_v34 = vmin.f32 %v354_v33, 0.0  ;;  %vm355_vm13 = vcmp.gt.f32.partialorder %v354_v33, 0.0 }
 0x3fc   :  { %v592_v27 = vmul.f32 1.442695, %v590_v24  ;;  %v594_v28 = vmul.f32 1.442695, %v591_v25 }
 0x3fd   :  { %v357_v36 = vmul.f32 1.442695, %v356_v34  ;;  %v863_v34 = vld [vmem:[#allocation3 + $0x38] sm:$0xff] }
 0x3fe   :  { %2454 = vpow2.f32 %v592_v27 }
 0x3ff   :  { %2456 = vpow2.f32 %v594_v28  ;;  %v860_v28 = vld [vmem:[#allocation3 + $0x20] sm:$0xff] }
 0x400   :  { %2458 = vpow2.f32 %v357_v36 }
 0x408   :  { %v2455_v35 = vpop.eup %2454 }
 0x409   :  { %v2457_v32 = vpop.eup %2456  ;;  %v2082_v37 = vadd.f32 -1.0, %v2455_v35  ;;  %v2351_v35 = vpack.c.bf16 %v861_v29, %v860_v28 }
 0x40a   :  { %v2083_v30 = vadd.f32 -1.0, %v2457_v32  ;;  %v2459_v8 = vpop.eup %2458  ;;  %v2355_v32 = vpack.c.bf16 %v863_v34, %v862_v31 }
 0x40b   :  { %v2765_v38 = vsel %vm588_vm14, %v586_v22, %v2082_v37  ;;  %v2076_v18 = vadd.f32 -1.0, %v2459_v8 }
 0x40c   :  { %v2770_v41 = vsel %vm589_vm15, %v587_v23, %v2083_v30  ;;  %v600_v0 = vsel %vm68_vm1, %v2765_v38, -3.4028235e+38  ;;  %v611_v42 = vsel %vm86_vm2, %v2765_v38, -3.4028235e+38 }
 0x40d   :  { %v602_v43 = vsel %vm74_vm4, %v600_v0, -inf  ;;  %v613_v44 = vsel %vm74_vm4, %v611_v42, -inf  ;;  %v623_v45 = vsel %vm107_vm3, %v2770_v41, -3.4028235e+38  ;;  %v634_v46 = vsel %vm123_vm5, %v2770_v41, -3.4028235e+38 }
 0x40e   :  { %v604_v47 = vmax.f32 %v602_v43, %v2768_v40  ;;  %v615_v48 = vmax.f32 %v613_v44, %v2768_v40  ;;  %v625_v49 = vsel %vm74_vm4, %v623_v45, -inf  ;;  %v636_v50 = vsel %vm74_vm4, %v634_v46, -inf }
 0x40f   :  { %v626_v51 = vmax.f32 %v2768_v40, %v625_v49  ;;  %v637_v52 = vmax.f32 %v2768_v40, %v636_v50  ;;  %v360_v25 = vsel %vm355_vm13, %v354_v33, %v2076_v18  ;;  %v2086_v33 = vld [vmem:[%s3036_s5 + $0x1] ss:$0 sm:$0xff] }
 0x410   :  { %v605_v53 = vrot.slane %v604_v47, 4  ;;  %v616_v54 = vrot.slane %v615_v48, 4 }
 0x411   :  { %v627_v55 = vrot.slane %v626_v51, 4  ;;  %v638_v56 = vrot.slane %v637_v52, 4 }
 0x412   :  { %v606_v57 = vmax.f32 %v604_v47, %v605_v53  ;;  %v617_v58 = vmax.f32 %v615_v48, %v616_v54 }
 0x413   :  { %v628_v59 = vmax.f32 %v626_v51, %v627_v55  ;;  %v639_v62 = vmax.f32 %v637_v52, %v638_v56 }
 0x414   :  { %v607_v63 = vrot.slane %v606_v57, 2  ;;  %v618_v5 = vrot.slane %v617_v58, 2 }
 0x415   :  { %v629_v6 = vrot.slane %v628_v59, 2  ;;  %v640_v7 = vrot.slane %v639_v62, 2 }
 0x416   :  { %v608_v9 = vmax.f32 %v606_v57, %v607_v63  ;;  %v619_v10 = vmax.f32 %v617_v58, %v618_v5  ;;  %v2093_v63 = vld [vmem:[%s3034_s3 + $0x1] ss:$0 sm:$0xff] }
 0x417   :  { %v630_v11 = vmax.f32 %v628_v59, %v629_v6  ;;  %v641_v13 = vmax.f32 %v639_v62, %v640_v7 }
 0x418   :  { %v609_v14 = vrot.slane %v608_v9, 1  ;;  %v620_v15 = vrot.slane %v619_v10, 1 }
 0x419   :  { %v631_v16 = vrot.slane %v630_v11, 1  ;;  %v642_v17 = vrot.slane %v641_v13, 1 }
 0x41a   :  { %v610_v19 = vmax.f32 %v608_v9, %v609_v14  ;;  %v621_v20 = vmax.f32 %v619_v10, %v620_v15 }
 0x41b   :  { %v632_v21 = vmax.f32 %v630_v11, %v631_v16  ;;  %v643_v22 = vmax.f32 %v641_v13, %v642_v17 }
 0x41c   :  { %v644_v23 = vsel %vm140_vm6, %v610_v19, %v621_v20 }
 0x41d   :  { %v645_v24 = vsel %vm142_vm7, %v644_v23, %v632_v21 }
 0x41e   :  { %v646_v26 = vsel %vm144_vm8, %v645_v24, %v643_v22 }
 0x41f   :  { %v647_v27 = vadd.f32 %v646_v26, %v360_v25 }
 0x421   :  { %2234 = vmatmul.mubr.msk.f32.vlgmr.msra.gmra.mrb[4].mxu1 %vm74_vm4, %v647_v27 }
 0x422   :  { %2256 = vmatprep.mubr.msk.f32.mxu1 %vm453_vm11, %v2713_v61 }
 0x4f4   :  { %v724_v36 = vpop.f32.mrb[4].mxu1 }
 0x4f5   :  { %v2235_v37 = vpop.f32.mrb[5].mxu1  ;;  %2237 = vmatpush3.msk.msra.mxu0 %vm234_vm9, %v724_v36 }
 0x4f6   :  { %2239 = vmatmul.mubr.msk.f32.vlgmr.msra.gmra.mrb[4].mxu0 %vm230_vm10, %v2581_v60  ;;  %2352 = vmatprep.subr.bf16.mxu0 %v2351_v35 }
 0x4f7   :  { %2354 = vmatpush3.bf16.msra.mxu0 %v2351_v35  ;;  %2249 = vmatprep.mubr.msk.f32.mxu0 %vm74_vm4, %v2765_v38 }
 0x4f8   :  { %2356 = vmatprep.subr.bf16.mxu0 %v2355_v32 }
 0x4fb   :  { %2358 = vmatpush3.bf16.msra.mxu0 %v2355_v32 }
 0x4fc   :  { %2270 = vmatprep.subr.mxu0 %v2580_v2 }
 0x4fe   :  { %2250 = vmatmul.mubr.msk.f32.vlgmr.msra.gmra.mrb[6].mxu0 %vm74_vm4, %v2770_v41 }
 0x4ff   :  { %2272 = vmatprep.mubr.msk.f32.mxu0 %vm2579_vm0, %v2580_v2 }
 0x5c9   :  { %v803_v30 = vpop.f32.mrb[4].mxu0 }
 0x5ca   :  { %v2811_v39 = vadd.f32 %v2086_v33, %v803_v30  ;;  %v2240_v0 = vpop.f32.mrb[5].mxu0  ;;  %v1142_v30 = vld [vmem:[#allocation6 + $0x40] sm:$0xff] }
 0x5cb   :  { %v1143_v0 = vld [vmem:[#allocation6 + $0x48] sm:$0xff] }
 0x5cc   :  { %v807_v38 = vsel %vm308_vm12, %v2811_v39, 0.0  ;;  %v817_v42 = vmul.f32 %v2811_v39, %v2811_v39 }
 0x5cd   :  { %808 = vadd.xlane.f32.xlu0 %v807_v38  ;;  %v1144_v38 = vld [vmem:[#allocation6 + $0x50] sm:$0xff] }
 0x5ce   :  { %v818_v41 = vsel %vm308_vm12, %v817_v42, 0.0  ;;  %v2364_v42 = vpack.c.bf16 %v1143_v0, %v1142_v30 }
 0x5cf   :  { %819 = vadd.xlane.f32.xlu1 %v818_v41  ;;  %v1145_v41 = vld [vmem:[#allocation6 + $0x58] sm:$0xff] }
 0x5d1   :  { %v2251_v43 = vpop.f32.mrb[6].mxu0 }
 0x5d2   :  { %v938_v44 = vpop.f32.mrb[7].mxu0 }
 0x5d3   :  { %v2359_v45 = vpack.c.bf16 %v2251_v43, %v938_v44  ;;  %v2367_v43 = vpack.c.bf16 %v1145_v41, %v1144_v38 }
 0x5d5   :  { %2360 = vmatprep.subr.bf16.mxu1 %v2359_v45 }
 0x5d6   :  { %2362 = vmatpush3.bf16.msra.mxu1 %v2359_v45 }
 0x5d7   :  { %2363 = vmatprep.subr.bf16.mxu1 %v2578_v1 }
 0x5d9   :  { %2257 = vmatmul.mubr.msk.f32.vlgmr.msra.gmra.mrb[6].mxu1 %vm453_vm11, %v2730_v12 }
 0x5da   :  { %2267 = vmatprep.mubr.msk.f32.mxu1 %vm2579_vm0, %v2580_v2  ;;  %2365 = vmatpush3.bf16.msra.mxu1 %v2364_v42 }
 0x5db   :  { %2366 = vmatprep.subr.bf16.mxu1 %v2578_v1 }
 0x5de   :  { %2368 = vmatpush3.bf16.msra.mxu1 %v2367_v43 }
 0x65a   :  { %v809_v46 = vpop.xlane.xlu0 %808 }
 0x65b   :  { %v810_v47 = vrot.slane %v809_v46, 4 }
 0x65c   :  { %v820_v48 = vpop.xlane.xlu1 %819 }
 0x65d   :  { %v811_v49 = vadd.f32 %v810_v47, %v809_v46  ;;  %v821_v50 = vrot.slane %v820_v48, 4 }
 0x65f   :  { %v812_v51 = vrot.slane %v811_v49, 2  ;;  %v822_v52 = vadd.f32 %v821_v50, %v820_v48 }
 0x661   :  { %v823_v53 = vrot.slane %v822_v52, 2  ;;  %v813_v54 = vadd.f32 %v812_v51, %v811_v49 }
 0x663   :  { %v814_v55 = vrot.slane %v813_v54, 1  ;;  %v824_v56 = vadd.f32 %v823_v53, %v822_v52 }
 0x665   :  { %v815_v57 = vadd.f32 %v814_v55, %v813_v54  ;;  %v825_v58 = vrot.slane %v824_v56, 1 }
 0x667   :  { %2411 = vpush %v815_v57  ;;  %v826_v59 = vadd.f32 %v825_v58, %v824_v56 }
 0x669   :  { %2413 = vpush %v826_v59 }
 0x698   :  { %s2412_s16 = spop %2411 }
 0x699   :  { %s2823_s17 = smul.f32 0.0078125, %s2412_s16 }
 0x69a   :  { %s2414_s20 = spop %2413 }
 0x69b   :  { %s831_s18 = smul.f32 128.0, %s2823_s17 }
 0x69d   :  { %s832_s19 = smul.f32 %s831_s18, %s2823_s17 }
 0x69f   :  { %s833_s21 = ssub.f32 %s2414_s20, %s832_s19 }
 0x6a1   :  { %s836_s22 = smul.f32 0.007874016, %s833_s21 }
 0x6a3   :  { %s837_s24 = smax.f32 %s2582_s23, %s836_s22 }
 0x6a4   :  { %v840_v62 = vstv %s837_s24 }
 0x6a5   :  { %2460 = vrsqrt.f32 %v840_v62  ;;  %vm843_vm14 = vcmp.eq.f32.partialorder %v840_v62, inf  ;;  %v846_v17 = vand.u32 2147483648, %v840_v62  ;;  %vm845_vm15 = vcmp.eq.f32.partialorder %v840_v62, 0.0 }
 0x6ac   :  { %v2258_v5 = vpop.f32.mrb[6].mxu1 }
 0x6ad   :  { %v2831_v6 = vadd.f32 %v2258_v5, %v2093_v63  ;;  %v1019_v7 = vpop.f32.mrb[7].mxu1 }
 0x6ae   :  { %v2833_v8 = vadd.f32 %v2093_v63, %v1019_v7 }
 0x6af   :  { %v2461_v9 = vpop.eup %2460  ;;  %v1029_v10 = vsel %vm74_vm4, %v2831_v6, 0.0  ;;  %v1041_v11 = vmul.f32 %v2831_v6, %v2831_v6 }
 0x6b0   :  { %v1028_v13 = vsel %vm74_vm4, %v2833_v8, 0.0  ;;  %v842_v14 = vmul.f32 %v2461_v9, %v840_v62  ;;  %v1040_v15 = vmul.f32 %v2833_v8, %v2833_v8 }
 0x6b1   :  { %v1030_v16 = vadd.f32 %v1029_v10, %v1028_v13  ;;  %v1043_v18 = vsel %vm74_vm4, %v1041_v11, 0.0 }
 0x6b2   :  { %v844_v19 = vsel %vm843_vm14, %v840_v62, %v842_v14  ;;  %v1042_v20 = vsel %vm74_vm4, %v1040_v15, 0.0  ;;  %v838_v62 = vstv %s2823_s17 }
 0x6b3   :  { %1031 = vadd.xlane.f32.xlu0 %v1030_v16  ;;  %v847_v21 = vsel %vm845_vm15, %v846_v17, %v844_v19  ;;  %v1044_v22 = vadd.f32 %v1043_v18, %v1042_v20  ;;  %v839_v9 = vsub.f32 %v2811_v39, %v838_v62 }
 0x6b4   :  { %2415 = vpush %v847_v21 }
 0x6b5   :  { %1045 = vadd.xlane.f32.xlu1 %v1044_v22 }
 0x6e5   :  { %s2416_s27 = spop %2415 }
 0x6e6   :  { %s849_s13 = sadd.f32 1e-05, %s2416_s27 }
 0x6e8   :  { %v850_v51 = vstv %s849_s13 }
 0x740   :  { %v1032_v23 = vpop.xlane.xlu0 %1031 }
 0x741   :  { %v1033_v24 = vrot.slane %v1032_v23, 4 }
 0x742   :  { %v1046_v25 = vpop.xlane.xlu1 %1045 }
 0x743   :  { %v1034_v26 = vadd.f32 %v1033_v24, %v1032_v23  ;;  %v1047_v27 = vrot.slane %v1046_v25, 4 }
 0x745   :  { %v1035_v28 = vrot.slane %v1034_v26, 2  ;;  %v1048_v29 = vadd.f32 %v1047_v27, %v1046_v25 }
 0x747   :  { %v1049_v31 = vrot.slane %v1048_v29, 2  ;;  %v1036_v34 = vadd.f32 %v1035_v28, %v1034_v26 }
 0x749   :  { %v1037_v35 = vrot.slane %v1036_v34, 1  ;;  %v1050_v36 = vadd.f32 %v1049_v31, %v1048_v29 }
 0x74b   :  { %v1038_v32 = vadd.f32 %v1037_v35, %v1036_v34  ;;  %v1051_v37 = vrot.slane %v1050_v36, 1 }
 0x74d   :  { %2417 = vpush %v1038_v32  ;;  %v1052_v33 = vadd.f32 %v1051_v37, %v1050_v36 }
 0x74f   :  { %2419 = vpush %v1052_v33 }
 0x77e   :  { %s2418_s29 = spop %2417 }
 0x77f   :  { %s1056_s2 = smul.f32 0.001953125, %s2418_s29 }
 0x780   :  { %s2420_s30 = spop %2419 }
 0x781   :  { %s1057_s28 = smul.f32 512.0, %s1056_s2  ;;  %v1064_v52 = vstv %s1056_s2 }
 0x782   :  { %v1065_v53 = vsub.f32 %v2833_v8, %v1064_v52  ;;  %v1066_v54 = vsub.f32 %v2831_v6, %v1064_v52 }
 0x783   :  { %s1058_s4 = smul.f32 %s1057_s28, %s1056_s2 }
 0x785   :  { %s1059_s9 = ssub.f32 %s2420_s30, %s1058_s4 }
 0x787   :  { %s1062_s10 = smul.f32 0.0019569471, %s1059_s9 }
 0x789   :  { %s1063_s1 = smax.f32 %s2582_s23, %s1062_s10 }
 0x78a   :  { %v1067_v44 = vstv %s1063_s1 }
 0x78b   :  { %2462 = vrsqrt.f32 %v1067_v44  ;;  %vm1070_vm13 = vcmp.eq.f32.partialorder %v1067_v44, inf  ;;  %v1073_v47 = vand.u32 2147483648, %v1067_v44  ;;  %vm1072_vm14 = vcmp.eq.f32.partialorder %v1067_v44, 0.0 }
 0x795   :  { %v2463_v45 = vpop.eup %2462 }
 0x796   :  { %v1069_v46 = vmul.f32 %v2463_v45, %v1067_v44 }
 0x798   :  { %v1071_v48 = vsel %vm1070_vm13, %v1067_v44, %v1069_v46 }
 0x799   :  { %v1074_v49 = vsel %vm1072_vm14, %v1073_v47, %v1071_v48 }
 0x79a   :  { %2421 = vpush %v1074_v49 }
 0x7cb   :  { %s2422_s11 = spop %2421 }
 0x7cc   :  { %s1076_s12 = sadd.f32 1e-05, %s2422_s11 }
 0x7ce   :  { %v1077_v50 = vstv %s1076_s12 }
 0x7cf   :  { %2464 = vrcp.f32 %v1077_v50 }
 0x7d0   :  { %2466 = vrcp.f32 %v850_v51 }
 0x7d9   :  { %v2465_v55 = vpop.eup %2464 }
 0x7da   :  { %v1079_v56 = vmul.f32 %v2465_v55, %v1065_v53  ;;  %v1080_v57 = vmul.f32 %v2465_v55, %v1066_v54  ;;  %v2467_v7 = vpop.eup %2466 }
 0x7db   :  { %v852_v10 = vmul.f32 %v2467_v7, %v839_v9  ;;  %v1355_v7 = vld [vmem:[#allocation3 + $0x50] sm:$0xff]  ;;  %v1356_v9 = vld [vmem:[#allocation3 + $0x58] sm:$0xff] }
 0x7dc   :  { %v1083_v58 = vmin.f32 %v1079_v56, 0.0  ;;  %v1084_v59 = vmin.f32 %v1080_v57, 0.0  ;;  %vm1081_vm15 = vcmp.gt.f32.partialorder %v1079_v56, 0.0  ;;  %vm1082_vm13 = vcmp.gt.f32.partialorder %v1080_v57, 0.0 }
 0x7dd   :  { %v854_v11 = vmin.f32 %v852_v10, 0.0  ;;  %vm853_vm14 = vcmp.gt.f32.partialorder %v852_v10, 0.0 }
 0x7de   :  { %v1085_v63 = vmul.f32 1.442695, %v1083_v58  ;;  %v1087_v5 = vmul.f32 1.442695, %v1084_v59 }
 0x7df   :  { %v855_v14 = vmul.f32 1.442695, %v854_v11 }
 0x7e0   :  { %2468 = vpow2.f32 %v1085_v63  ;;  %v1353_v63 = vld [vmem:[#allocation3 + $0x40] sm:$0xff] }
 0x7e1   :  { %2470 = vpow2.f32 %v1087_v5  ;;  %v1354_v5 = vld [vmem:[#allocation3 + $0x48] sm:$0xff] }
 0x7e2   :  { %2472 = vpow2.f32 %v855_v14  ;;  %v2369_v11 = vpack.c.bf16 %v1354_v5, %v1353_v63  ;;  %v2373_v14 = vpack.c.bf16 %v1356_v9, %v1355_v7 }
 0x7ea   :  { %v2469_v13 = vpop.eup %2468 }
 0x7eb   :  { %v2471_v8 = vpop.eup %2470  ;;  %v2096_v15 = vadd.f32 -1.0, %v2469_v13 }
 0x7ec   :  { %v2097_v6 = vadd.f32 -1.0, %v2471_v8  ;;  %v2473_v41 = vpop.eup %2472 }
 0x7ed   :  { %v1091_v16 = vsel %vm1081_vm15, %v1079_v56, %v2096_v15  ;;  %v2089_v51 = vadd.f32 -1.0, %v2473_v41 }
 0x7ee   :  { %v2851_v17 = vsel %vm1082_vm13, %v1080_v57, %v2097_v6  ;;  %v1093_v18 = vsel %vm68_vm1, %v1091_v16, -3.4028235e+38  ;;  %v1104_v39 = vsel %vm86_vm2, %v1091_v16, -3.4028235e+38 }
 0x7ef   :  { %v1095_v19 = vsel %vm74_vm4, %v1093_v18, -inf  ;;  %v1106_v20 = vsel %vm74_vm4, %v1104_v39, -inf  ;;  %v1116_v21 = vsel %vm107_vm3, %v2851_v17, -3.4028235e+38  ;;  %v1127_v22 = vsel %vm123_vm5, %v2851_v17, -3.4028235e+38 }
 0x7f0   :  { %v1097_v23 = vmax.f32 %v1095_v19, %v2768_v40  ;;  %v1108_v24 = vmax.f32 %v1106_v20, %v2768_v40  ;;  %v1118_v25 = vsel %vm74_vm4, %v1116_v21, -inf  ;;  %v1129_v26 = vsel %vm74_vm4, %v1127_v22, -inf }
 0x7f1   :  { %v1119_v27 = vmax.f32 %v2768_v40, %v1118_v25  ;;  %v1130_v28 = vmax.f32 %v2768_v40, %v1129_v26  ;;  %v858_v58 = vsel %vm853_vm14, %v852_v10, %v2089_v51 }
 0x7f2   :  { %v1098_v29 = vrot.slane %v1097_v23, 4  ;;  %v1109_v31 = vrot.slane %v1108_v24, 4 }
 0x7f3   :  { %v1120_v34 = vrot.slane %v1119_v27, 4  ;;  %v1131_v35 = vrot.slane %v1130_v28, 4 }
 0x7f4   :  { %v1099_v36 = vmax.f32 %v1097_v23, %v1098_v29  ;;  %v1110_v32 = vmax.f32 %v1108_v24, %v1109_v31 }
 0x7f5   :  { %v1121_v37 = vmax.f32 %v1119_v27, %v1120_v34  ;;  %v1132_v33 = vmax.f32 %v1130_v28, %v1131_v35 }
 0x7f6   :  { %v1100_v30 = vrot.slane %v1099_v36, 2  ;;  %v1111_v0 = vrot.slane %v1110_v32, 2 }
 0x7f7   :  { %v1122_v38 = vrot.slane %v1121_v37, 2  ;;  %v1133_v42 = vrot.slane %v1132_v33, 2 }
 0x7f8   :  { %v1101_v43 = vmax.f32 %v1099_v36, %v1100_v30  ;;  %v1112_v44 = vmax.f32 %v1110_v32, %v1111_v0 }
 0x7f9   :  { %v1123_v45 = vmax.f32 %v1121_v37, %v1122_v38  ;;  %v1134_v46 = vmax.f32 %v1132_v33, %v1133_v42 }
 0x7fa   :  { %v1102_v47 = vrot.slane %v1101_v43, 1  ;;  %v1113_v48 = vrot.slane %v1112_v44, 1 }
 0x7fb   :  { %v1124_v49 = vrot.slane %v1123_v45, 1  ;;  %v1135_v50 = vrot.slane %v1134_v46, 1 }
 0x7fc   :  { %v1103_v52 = vmax.f32 %v1101_v43, %v1102_v47  ;;  %v1114_v53 = vmax.f32 %v1112_v44, %v1113_v48 }
 0x7fd   :  { %v1125_v54 = vmax.f32 %v1123_v45, %v1124_v49  ;;  %v1136_v55 = vmax.f32 %v1134_v46, %v1135_v50 }
 0x7fe   :  { %v1137_v56 = vsel %vm140_vm6, %v1103_v52, %v1114_v53 }
 0x7ff   :  { %v1138_v57 = vsel %vm142_vm7, %v1137_v56, %v1125_v54 }
 0x800   :  { %v1139_v59 = vsel %vm144_vm8, %v1138_v57, %v1136_v55 }
 0x801   :  { %v1140_v62 = vadd.f32 %v1139_v59, %v858_v58 }
 0x803   :  { %2268 = vmatmul.mubr.msk.f32.vlgmr.msra.gmra.mrb[8].mxu1 %vm74_vm4, %v1140_v62 }
 0x804   :  { %2290 = vmatprep.mubr.msk.f32.mxu1 %vm453_vm11, %v2713_v61  ;;  %v2100_v61 = vld [vmem:[%s3036_s5 + $0x2] ss:$0 sm:$0xff] }
 0x8d6   :  { %v1217_v13 = vpop.f32.mrb[8].mxu1 }
 0x8d7   :  { %v2269_v8 = vpop.f32.mrb[9].mxu1  ;;  %2271 = vmatpush3.msk.msra.mxu0 %vm234_vm9, %v1217_v13 }
 0x8d8   :  { %2273 = vmatmul.mubr.msk.f32.vlgmr.msra.gmra.mrb[8].mxu0 %vm230_vm10, %v2581_v60  ;;  %2370 = vmatprep.subr.bf16.mxu0 %v2369_v11  ;;  %v1636_v8 = vld [vmem:[#allocation6 + $0x68] sm:$0xff] }
 0x8d9   :  { %2372 = vmatpush3.bf16.msra.mxu0 %v2369_v11  ;;  %2283 = vmatprep.mubr.msk.f32.mxu0 %vm74_vm4, %v1091_v16 }
 0x8da   :  { %2374 = vmatprep.subr.bf16.mxu0 %v2373_v14 }
 0x8dd   :  { %2376 = vmatpush3.bf16.msra.mxu0 %v2373_v14  ;;  %v1635_v14 = vld [vmem:[#allocation6 + $0x60] sm:$0xff] }
 0x8de   :  { %2304 = vmatprep.subr.mxu0 %v2580_v2 }
 0x8e0   :  { %2284 = vmatmul.mubr.msk.f32.vlgmr.msra.gmra.mrb[10].mxu0 %vm74_vm4, %v2851_v17 }
 0x8e1   :  { %2306 = vmatprep.mubr.msk.f32.mxu0 %vm2579_vm0, %v2580_v2 }
 0x9ab   :  { %v1296_v10 = vpop.f32.mrb[8].mxu0 }
 0x9ac   :  { %v2889_v15 = vadd.f32 %v2100_v61, %v1296_v10  ;;  %v2274_v6 = vpop.f32.mrb[9].mxu0  ;;  %v1637_v61 = vld [vmem:[#allocation6 + $0x70] sm:$0xff]  ;;  %v2382_v10 = vpack.c.bf16 %v1636_v8, %v1635_v14 }
 0x9ad   :  { %v1638_v6 = vld [vmem:[#allocation6 + $0x78] sm:$0xff] }
 0x9ae   :  { %v1300_v16 = vsel %vm308_vm12, %v2889_v15, 0.0  ;;  %v1310_v18 = vmul.f32 %v2889_v15, %v2889_v15 }
 0x9af   :  { %1301 = vadd.xlane.f32.xlu0 %v1300_v16  ;;  %v2385_v16 = vpack.c.bf16 %v1638_v6, %v1637_v61 }
 0x9b0   :  { %v1311_v17 = vsel %vm308_vm12, %v1310_v18, 0.0 }
 0x9b1   :  { %1312 = vadd.xlane.f32.xlu1 %v1311_v17 }
 0x9b3   :  { %v2285_v39 = vpop.f32.mrb[10].mxu0 }
 0x9b4   :  { %v1431_v19 = vpop.f32.mrb[11].mxu0 }
 0x9b5   :  { %v2377_v20 = vpack.c.bf16 %v2285_v39, %v1431_v19 }
 0x9b7   :  { %2378 = vmatprep.subr.bf16.mxu1 %v2377_v20 }
 0x9b8   :  { %2380 = vmatpush3.bf16.msra.mxu1 %v2377_v20 }
 0x9b9   :  { %2381 = vmatprep.subr.bf16.mxu1 %v2578_v1 }
 0x9bb   :  { %2291 = vmatmul.mubr.msk.f32.vlgmr.msra.gmra.mrb[10].mxu1 %vm453_vm11, %v2730_v12  ;;  %v2107_v12 = vld [vmem:[%s3034_s3 + $0x2] ss:$0 sm:$0xff] }
 0x9bc   :  { %2301 = vmatprep.mubr.msk.f32.mxu1 %vm2579_vm0, %v2580_v2  ;;  %2383 = vmatpush3.bf16.msra.mxu1 %v2382_v10 }
 0x9bd   :  { %2384 = vmatprep.subr.bf16.mxu1 %v2578_v1 }
 0x9c0   :  { %2386 = vmatpush3.bf16.msra.mxu1 %v2385_v16 }
 0xa3c   :  { %v1302_v21 = vpop.xlane.xlu0 %1301 }
 0xa3d   :  { %v1303_v22 = vrot.slane %v1302_v21, 4 }
 0xa3e   :  { %v1313_v23 = vpop.xlane.xlu1 %1312 }
 0xa3f   :  { %v1304_v24 = vadd.f32 %v1303_v22, %v1302_v21  ;;  %v1314_v25 = vrot.slane %v1313_v23, 4 }
 0xa41   :  { %v1305_v26 = vrot.slane %v1304_v24, 2  ;;  %v1315_v27 = vadd.f32 %v1314_v25, %v1313_v23 }
 0xa43   :  { %v1316_v28 = vrot.slane %v1315_v27, 2  ;;  %v1306_v29 = vadd.f32 %v1305_v26, %v1304_v24 }
 0xa45   :  { %v1307_v31 = vrot.slane %v1306_v29, 1  ;;  %v1317_v34 = vadd.f32 %v1316_v28, %v1315_v27 }
 0xa47   :  { %v1308_v35 = vadd.f32 %v1307_v31, %v1306_v29  ;;  %v1318_v36 = vrot.slane %v1317_v34, 1 }
 0xa49   :  { %2423 = vpush %v1308_v35  ;;  %v1319_v32 = vadd.f32 %v1318_v36, %v1317_v34 }
 0xa4b   :  { %2425 = vpush %v1319_v32 }
 0xa7a   :  { %s2424_s16 = spop %2423 }
 0xa7b   :  { %s2901_s17 = smul.f32 0.0078125, %s2424_s16 }
 0xa7c   :  { %s2426_s20 = spop %2425 }
 0xa7d   :  { %s1324_s18 = smul.f32 128.0, %s2901_s17  ;;  %v1331_v34 = vstv %s2901_s17 }
 0xa7f   :  { %s1325_s19 = smul.f32 %s1324_s18, %s2901_s17 }
 0xa81   :  { %s1326_s21 = ssub.f32 %s2426_s20, %s1325_s19 }
 0xa83   :  { %s1329_s22 = smul.f32 0.007874016, %s1326_s21  ;;  %s2011_s21 = ssub.f32 1.0, %s3037_s6 }
 0xa85   :  { %s1330_s24 = smax.f32 %s2582_s23, %s1329_s22 }
 0xa86   :  { %v1333_v2 = vstv %s1330_s24 }
 0xa87   :  { %2474 = vrsqrt.f32 %v1333_v2  ;;  %vm1336_vm0 = vcmp.eq.f32.partialorder %v1333_v2, inf  ;;  %v1339_v47 = vand.u32 2147483648, %v1333_v2  ;;  %vm1338_vm12 = vcmp.eq.f32.partialorder %v1333_v2, 0.0 }
 0xa8e   :  { %v2292_v37 = vpop.f32.mrb[10].mxu1 }
 0xa8f   :  { %v2909_v33 = vadd.f32 %v2292_v37, %v2107_v12  ;;  %v1512_v30 = vpop.f32.mrb[11].mxu1 }
 0xa90   :  { %v2911_v0 = vadd.f32 %v2107_v12, %v1512_v30 }
 0xa91   :  { %v2475_v38 = vpop.eup %2474  ;;  %v1522_v42 = vsel %vm74_vm4, %v2909_v33, 0.0  ;;  %v1534_v41 = vmul.f32 %v2909_v33, %v2909_v33 }
 0xa92   :  { %v1521_v43 = vsel %vm74_vm4, %v2911_v0, 0.0  ;;  %v1335_v44 = vmul.f32 %v2475_v38, %v1333_v2  ;;  %v1533_v45 = vmul.f32 %v2911_v0, %v2911_v0 }
 0xa93   :  { %v1523_v46 = vadd.f32 %v1522_v42, %v1521_v43  ;;  %v1536_v48 = vsel %vm74_vm4, %v1534_v41, 0.0 }
 0xa94   :  { %v1337_v49 = vsel %vm1336_vm0, %v1333_v2, %v1335_v44  ;;  %v1535_v50 = vsel %vm74_vm4, %v1533_v45, 0.0  ;;  %v1332_v2 = vsub.f32 %v2889_v15, %v1331_v34  ;;  %v1796_v34 = vld [vmem:[#allocation3 + $0x70] sm:$0xff] }
 0xa95   :  { %1524 = vadd.xlane.f32.xlu0 %v1523_v46  ;;  %v1340_v51 = vsel %vm1338_vm12, %v1339_v47, %v1337_v49  ;;  %v1537_v52 = vadd.f32 %v1536_v48, %v1535_v50 }
 0xa96   :  { %2427 = vpush %v1340_v51 }
 0xa97   :  { %1538 = vadd.xlane.f32.xlu1 %v1537_v52 }
 0xac7   :  { %s2428_s27 = spop %2427 }
 0xac8   :  { %s1342_s13 = sadd.f32 1e-05, %s2428_s27  ;;  %s2546_s27 = scalar_lea.vmem %s2059_s26, 64 }
 0xac9   :  { %p2547_p2 = scmp.ne.s32.totalorder %s2059_s26, %s2546_s27  ;;  %p2552_p4 = scmp.lt.s32.totalorder %s2546_s27, %s2546_s27 }
 0xaca   :  { %v1343_v22 = vstv %s1342_s13 }
 0xacb   :  { %p2553_p5 = por %p2552_p4, %p2551_p3 }
 0xacd   :  { %p2554_p6 = pnand %p2553_p5, %p2547_p2 }
 0xb22   :  { %v1525_v53 = vpop.xlane.xlu0 %1524 }
 0xb23   :  { %v1526_v54 = vrot.slane %v1525_v53, 4 }
 0xb24   :  { %v1539_v55 = vpop.xlane.xlu1 %1538 }
 0xb25   :  { %v1527_v56 = vadd.f32 %v1526_v54, %v1525_v53  ;;  %v1540_v57 = vrot.slane %v1539_v55, 4 }
 0xb27   :  { %v1528_v58 = vrot.slane %v1527_v56, 2  ;;  %v1541_v59 = vadd.f32 %v1540_v57, %v1539_v55 }
 0xb29   :  { %v1542_v62 = vrot.slane %v1541_v59, 2  ;;  %v1529_v63 = vadd.f32 %v1528_v58, %v1527_v56 }
 0xb2b   :  { %v1530_v5 = vrot.slane %v1529_v63, 1  ;;  %v1543_v7 = vadd.f32 %v1542_v62, %v1541_v59 }
 0xb2d   :  { %v1531_v9 = vadd.f32 %v1530_v5, %v1529_v63  ;;  %v1544_v11 = vrot.slane %v1543_v7, 1 }
 0xb2f   :  { %2429 = vpush %v1531_v9  ;;  %v1545_v13 = vadd.f32 %v1544_v11, %v1543_v7 }
 0xb31   :  { %2431 = vpush %v1545_v13 }
 0xb60   :  { %s2430_s29 = spop %2429 }
 0xb61   :  { %s1549_s2 = smul.f32 0.001953125, %s2430_s29 }
 0xb62   :  { %s2432_s30 = spop %2431 }
 0xb63   :  { %s1550_s28 = smul.f32 512.0, %s1549_s2  ;;  %v1557_v23 = vstv %s1549_s2 }
 0xb64   :  { %v1558_v24 = vsub.f32 %v2911_v0, %v1557_v23  ;;  %v1559_v25 = vsub.f32 %v2909_v33, %v1557_v23 }
 0xb65   :  { %s1551_s4 = smul.f32 %s1550_s28, %s1549_s2 }
 0xb67   :  { %s1552_s9 = ssub.f32 %s2432_s30, %s1551_s4 }
 0xb69   :  { %s1555_s10 = smul.f32 0.0019569471, %s1552_s9 }
 0xb6b   :  { %s1556_s1 = smax.f32 %s2582_s23, %s1555_s10 }
 0xb6c   :  { %v1560_v18 = vstv %s1556_s1 }
 0xb6d   :  { %2476 = vrsqrt.f32 %v1560_v18  ;;  %vm1563_vm15 = vcmp.eq.f32.partialorder %v1560_v18, inf  ;;  %v1566_v19 = vand.u32 2147483648, %v1560_v18  ;;  %vm1565_vm13 = vcmp.eq.f32.partialorder %v1560_v18, 0.0 }
 0xb77   :  { %v2477_v17 = vpop.eup %2476 }
 0xb78   :  { %v1562_v39 = vmul.f32 %v2477_v17, %v1560_v18 }
 0xb7a   :  { %v1564_v20 = vsel %vm1563_vm15, %v1560_v18, %v1562_v39 }
 0xb7b   :  { %v1567_v1 = vsel %vm1565_vm13, %v1566_v19, %v1564_v20 }
 0xb7c   :  { %2433 = vpush %v1567_v1 }
 0xbad   :  { %s2434_s11 = spop %2433 }
 0xbae   :  { %s1569_s12 = sadd.f32 1e-05, %s2434_s11 }
 0xbb0   :  { %v1570_v21 = vstv %s1569_s12 }
 0xbb1   :  { %2478 = vrcp.f32 %v1570_v21 }
 0xbb2   :  { %2480 = vrcp.f32 %v1343_v22 }
 0xbbb   :  { %v2479_v26 = vpop.eup %2478 }
 0xbbc   :  { %v1572_v27 = vmul.f32 %v2479_v26, %v1558_v24  ;;  %v1573_v28 = vmul.f32 %v2479_v26, %v1559_v25  ;;  %v2481_v32 = vpop.eup %2480 }
 0xbbd   :  { %v1345_v12 = vmul.f32 %v2481_v32, %v1332_v2 }
 0xbbe   :  { %v1576_v29 = vmin.f32 %v1572_v27, 0.0  ;;  %v1577_v31 = vmin.f32 %v1573_v28, 0.0  ;;  %vm1574_vm14 = vcmp.gt.f32.partialorder %v1572_v27, 0.0  ;;  %vm1575_vm0 = vcmp.gt.f32.partialorder %v1573_v28, 0.0 }
 0xbbf   :  { %v1347_v37 = vmin.f32 %v1345_v12, 0.0  ;;  %vm1346_vm12 = vcmp.gt.f32.partialorder %v1345_v12, 0.0 }
 0xbc0   :  { %v1578_v35 = vmul.f32 1.442695, %v1576_v29  ;;  %v1580_v36 = vmul.f32 1.442695, %v1577_v31  ;;  %v1794_v29 = vld [vmem:[#allocation3 + $0x60] sm:$0xff]  ;;  %v1795_v31 = vld [vmem:[#allocation3 + $0x68] sm:$0xff] }
 0xbc1   :  { %v1348_v38 = vmul.f32 1.442695, %v1347_v37 }
 0xbc2   :  { %2482 = vpow2.f32 %v1578_v35  ;;  %v1797_v35 = vld [vmem:[#allocation3 + $0x78] sm:$0xff] }
 0xbc3   :  { %2484 = vpow2.f32 %v1580_v36  ;;  %v2387_v36 = vpack.c.bf16 %v1795_v31, %v1794_v29  ;;  %v2391_v2 = vpack.c.bf16 %v1797_v35, %v1796_v34 }
 0xbc4   :  { %2486 = vpow2.f32 %v1348_v38 }
 0xbcc   :  { %v2483_v30 = vpop.eup %2482 }
 0xbcd   :  { %v2485_v0 = vpop.eup %2484  ;;  %v2110_v42 = vadd.f32 -1.0, %v2483_v30 }
 0xbce   :  { %v2111_v33 = vadd.f32 -1.0, %v2485_v0  ;;  %v2487_v14 = vpop.eup %2486 }
 0xbcf   :  { %v1584_v41 = vsel %vm1574_vm14, %v1572_v27, %v2110_v42  ;;  %v2103_v19 = vadd.f32 -1.0, %v2487_v14 }
 0xbd0   :  { %v2929_v43 = vsel %vm1575_vm0, %v1573_v28, %v2111_v33  ;;  %v1586_v44 = vsel %vm68_vm1, %v1584_v41, -3.4028235e+38  ;;  %v1597_v15 = vsel %vm86_vm2, %v1584_v41, -3.4028235e+38  ;;  %v2500_v28 = vld [vmem:[%s3031_s0] sm:$0xff] }
 0xbd1   :  { %v1588_v45 = vsel %vm74_vm4, %v1586_v44, -inf  ;;  %v1599_v46 = vsel %vm74_vm4, %v1597_v15, -inf  ;;  %v1609_v47 = vsel %vm107_vm3, %v2929_v43, -3.4028235e+38  ;;  %v1620_v48 = vsel %vm123_vm5, %v2929_v43, -3.4028235e+38 }
 0xbd2   :  { %v1590_v49 = vmax.f32 %v1588_v45, %v2768_v40  ;;  %v1601_v50 = vmax.f32 %v1599_v46, %v2768_v40  ;;  %v1611_v51 = vsel %vm74_vm4, %v1609_v47, -inf  ;;  %v1622_v52 = vsel %vm74_vm4, %v1620_v48, -inf  ;;  %v2120_v33 = vld [vmem:[%s3034_s3 + $0x3] ss:$0 sm:$0xff] }
 0xbd3   :  { %v1612_v53 = vmax.f32 %v2768_v40, %v1611_v51  ;;  %v1623_v54 = vmax.f32 %v2768_v40, %v1622_v52  ;;  %v1351_v25 = vsel %vm1346_vm12, %v1345_v12, %v2103_v19 }
 0xbd4   :  { %v1591_v55 = vrot.slane %v1590_v49, 4  ;;  %v1602_v56 = vrot.slane %v1601_v50, 4 }
 0xbd5   :  { %v1613_v57 = vrot.slane %v1612_v53, 4  ;;  %v1624_v58 = vrot.slane %v1623_v54, 4 }
 0xbd6   :  { %v1592_v59 = vmax.f32 %v1590_v49, %v1591_v55  ;;  %v1603_v62 = vmax.f32 %v1601_v50, %v1602_v56 }
 0xbd7   :  { %v1614_v63 = vmax.f32 %v1612_v53, %v1613_v57  ;;  %v1625_v5 = vmax.f32 %v1623_v54, %v1624_v58 }
 0xbd8   :  { %v1593_v7 = vrot.slane %v1592_v59, 2  ;;  %v1604_v9 = vrot.slane %v1603_v62, 2 }
 0xbd9   :  { %v1615_v11 = vrot.slane %v1614_v63, 2  ;;  %v1626_v13 = vrot.slane %v1625_v5, 2 }
 0xbda   :  { %v1594_v8 = vmax.f32 %v1592_v59, %v1593_v7  ;;  %v1605_v61 = vmax.f32 %v1603_v62, %v1604_v9 }
 0xbdb   :  { %v1616_v10 = vmax.f32 %v1614_v63, %v1615_v11  ;;  %v1627_v6 = vmax.f32 %v1625_v5, %v1626_v13 }
 0xbdc   :  { %v1595_v16 = vrot.slane %v1594_v8, 1  ;;  %v1606_v18 = vrot.slane %v1605_v61, 1 }
 0xbdd   :  { %v1617_v17 = vrot.slane %v1616_v10, 1  ;;  %v1628_v39 = vrot.slane %v1627_v6, 1 }
 0xbde   :  { %v1596_v20 = vmax.f32 %v1594_v8, %v1595_v16  ;;  %v1607_v1 = vmax.f32 %v1605_v61, %v1606_v18  ;;  %v2114_v16 = vld [vmem:[%s3036_s5 + $0x3] ss:$0 sm:$0xff] }
 0xbdf   :  { %v1618_v21 = vmax.f32 %v1616_v10, %v1617_v17  ;;  %v1629_v22 = vmax.f32 %v1627_v6, %v1628_v39 }
 0xbe0   :  { %v1630_v23 = vsel %vm140_vm6, %v1596_v20, %v1607_v1 }
 0xbe1   :  { %v1631_v24 = vsel %vm142_vm7, %v1630_v23, %v1618_v21 }
 0xbe2   :  { %v1632_v26 = vsel %vm144_vm8, %v1631_v24, %v1629_v22  ;;  %v2012_v22 = vstv %s2011_s21 }
 0xbe3   :  { %v1633_v27 = vadd.f32 %v1632_v26, %v1351_v25  ;;  %v2009_v25 = vstv %s3037_s6 }
 0xbe5   :  { %2302 = vmatmul.mubr.msk.f32.vlgmr.msra.gmra.mrb[12].mxu1 %vm74_vm4, %v1633_v27 }
 0xbe6   :  { %2324 = vmatprep.mubr.msk.f32.mxu1 %vm453_vm11, %v2500_v28 }
 0xcb8   :  { %v1710_v32 = vpop.f32.mrb[12].mxu1 }
 0xcb9   :  { %v2303_v37 = vpop.f32.mrb[13].mxu1  ;;  %2305 = vmatpush3.msk.msra.mxu0 %vm234_vm9, %v1710_v32 }
 0xcba   :  { %2307 = vmatmul.mubr.msk.f32.vlgmr.msra.gmra.mrb[12].mxu0 %vm230_vm10, %v2581_v60  ;;  %2388 = vmatprep.subr.bf16.mxu0 %v2387_v36  ;;  %v2501_v60 = vld [vmem:[%s3031_s0 + $0x8] sm:$0xff] }
 0xcbb   :  { %2390 = vmatpush3.bf16.msra.mxu0 %v2387_v36  ;;  %2317 = vmatprep.mubr.msk.f32.mxu0 %vm74_vm4, %v1584_v41 }
 0xcbc   :  { %2392 = vmatprep.subr.bf16.mxu0 %v2391_v2 }
 0xcbf   :  { %2394 = vmatpush3.bf16.msra.mxu0 %v2391_v2 }
 0xcc2   :  { %2318 = vmatmul.mubr.msk.f32.vlgmr.msra.gmra.mrb[14].mxu0 %vm74_vm4, %v2929_v43 }
 0xd8d   :  { %v1789_v12 = vpop.f32.mrb[12].mxu0 }
 0xd8e   :  { %v2308_v30 = vpop.f32.mrb[13].mxu0  ;;  %v1790_v1 = vadd.f32 %v2114_v16, %v1789_v12 }
 0xd90   :  { %v2013_v28 = vmul.f32 %v2012_v22, %v1790_v1 }
 0xd95   :  { %v2319_v38 = vpop.f32.mrb[14].mxu0 }
 0xd96   :  { %v1872_v0 = vpop.f32.mrb[15].mxu0 }
 0xd97   :  { %v2395_v42 = vpack.c.bf16 %v2319_v38, %v1872_v0 }
 0xd99   :  { %2396 = vmatprep.subr.bf16.mxu1 %v2395_v42 }
 0xd9a   :  { %2398 = vmatpush3.bf16.msra.mxu1 %v2395_v42 }
 0xd9d   :  { %2325 = vmatmul.mubr.msk.f32.vlgmr.msra.gmra.mrb[14].mxu1 %vm453_vm11, %v2501_v60 }
 0xe70   :  { %v2326_v41 = vpop.f32.mrb[14].mxu1 }
 0xe71   :  { %v2970_v44 = vadd.f32 %v2326_v41, %v2120_v33  ;;  %v1953_v43 = vpop.f32.mrb[15].mxu1 }
 0xe72   :  { %v1954_v15 = vadd.f32 %v2120_v33, %v1953_v43 }
 0xe73   :  { %v1985_v45 = vsel %vm107_vm3, %v2970_v44, -3.4028235e+38  ;;  %v1996_v46 = vsel %vm123_vm5, %v2970_v44, -3.4028235e+38  ;;  %v2031_v35 = vsel %vm230_vm10, %v2970_v44, -inf }
 0xe74   :  { %v1987_v47 = vsel %vm74_vm4, %v1985_v45, -inf  ;;  %v1998_v48 = vsel %vm74_vm4, %v1996_v46, -inf  ;;  %v1962_v49 = vsel %vm68_vm1, %v1954_v15, -3.4028235e+38  ;;  %v1973_v50 = vsel %vm86_vm2, %v1954_v15, -3.4028235e+38 }
 0xe75   :  { %v1988_v51 = vmax.f32 %v2768_v40, %v1987_v47  ;;  %v1999_v52 = vmax.f32 %v2768_v40, %v1998_v48  ;;  %v1964_v53 = vsel %vm74_vm4, %v1962_v49, -inf  ;;  %v1975_v54 = vsel %vm74_vm4, %v1973_v50, -inf }
 0xe76   :  { %v1966_v4 = vmax.f32 %v1964_v53, %v2768_v40  ;;  %v1977_v55 = vmax.f32 %v1975_v54, %v2768_v40  ;;  %v2028_v56 = vsel %vm230_vm10, %v1954_v15, -inf  ;;  %vm2015_vm1 = vcmask 27648  }
 0xe77   :  { %v1989_v57 = vrot.slane %v1988_v51, 4  ;;  %v2000_v58 = vrot.slane %v1999_v52, 4  ;;  %2029 = vmax.xlane.f32.xlu1 %v2028_v56 }
 0xe78   :  { %v1967_v59 = vrot.slane %v1966_v4, 4  ;;  %v1978_v3 = vrot.slane %v1977_v55, 4 }
 0xe79   :  { %v1990_v62 = vmax.f32 %v1988_v51, %v1989_v57  ;;  %v2001_v63 = vmax.f32 %v1999_v52, %v2000_v58 }
 0xe7a   :  { %v1968_v5 = vmax.f32 %v1966_v4, %v1967_v59  ;;  %v1979_v7 = vmax.f32 %v1977_v55, %v1978_v3 }
 0xe7b   :  { %v1991_v9 = vrot.slane %v1990_v62, 2  ;;  %v2002_v11 = vrot.slane %v2001_v63, 2 }
 0xe7c   :  { %v1969_v13 = vrot.slane %v1968_v5, 2  ;;  %v1980_v14 = vrot.slane %v1979_v7, 2 }
 0xe7d   :  { %v1992_v8 = vmax.f32 %v1990_v62, %v1991_v9  ;;  %v2003_v61 = vmax.f32 %v2001_v63, %v2002_v11 }
 0xe7e   :  { %v1970_v10 = vmax.f32 %v1968_v5, %v1969_v13  ;;  %v1981_v6 = vmax.f32 %v1979_v7, %v1980_v14 }
 0xe7f   :  { %v1993_v40 = vrot.slane %v1992_v8, 1  ;;  %v2004_v39 = vrot.slane %v2003_v61, 1 }
 0xe80   :  { %v1971_v18 = vrot.slane %v1970_v10, 1  ;;  %v1982_v17 = vrot.slane %v1981_v6, 1 }
 0xe81   :  { %v1994_v21 = vmax.f32 %v1992_v8, %v1993_v40  ;;  %v2005_v23 = vmax.f32 %v2003_v61, %v2004_v39 }
 0xe82   :  { %v1972_v19 = vmax.f32 %v1970_v10, %v1971_v18  ;;  %v1983_v20 = vmax.f32 %v1981_v6, %v1982_v17 }
 0xe84   :  { %v2006_v24 = vsel %vm140_vm6, %v1972_v19, %v1983_v20 }
 0xe85   :  { %v2007_v26 = vsel %vm142_vm7, %v2006_v24, %v1994_v21 }
 0xe86   :  { %v2008_v27 = vsel %vm144_vm8, %v2007_v26, %v2005_v23 }
 0xe87   :  { %v2010_v29 = vmul.f32 %v2009_v25, %v2008_v27 }
 0xe89   :  { %v2014_v31 = vadd.f32 %v2013_v28, %v2010_v29 }
 0xe8b   :  { %v2016_v34 = vsel %vm2015_vm1, %v2014_v31, -inf }
 0xe8c   :  { %2017 = vmax.xlane.f32.xlu0 %v2016_v34 }
 0xe90   :  { %2032 = vmax.xlane.f32.xlu0 %v2031_v35 }
 0xf04   :  { %v2030_v36 = vpop.xlane.xlu1 %2029 }
 0xf05   :  { %v2034_v32 = vsub.f32 %v1954_v15, %v2030_v36 }
 0xf07   :  { %v2036_v2 = vmul.f32 1.442695, %v2034_v32 }
 0xf09   :  { %2488 = vpow2.f32 %v2036_v2 }
 0xf13   :  { %v2489_v37 = vpop.eup %2488 }
 0xf14   :  { %v2040_v12 = vsel %vm230_vm10, %v2489_v37, 0.0 }
 0xf15   :  { %2041 = vadd.xlane.f32.xlu0 %v2040_v12 }
 0xf19   :  { %v2018_v30 = vpop.xlane.xlu0 %2017 }
 0xf1a   :  { %v2019_v38 = vsub.f32 %v2014_v31, %v2018_v30 }
 0xf1c   :  { %v2020_v0 = vmul.f32 1.442695, %v2019_v38 }
 0xf1d   :  { %v2033_v42 = vpop.xlane.xlu0 %2032 }
 0xf1e   :  { %2490 = vpow2.f32 %v2020_v0  ;;  %v2035_v60 = vsub.f32 %v2970_v44, %v2033_v42 }
 0xf20   :  { %v2038_v33 = vmul.f32 1.442695, %v2035_v60 }
 0xf22   :  { %2492 = vpow2.f32 %v2038_v33 }
 0xf28   :  { %v2491_v41 = vpop.eup %2490 }
 0xf29   :  { %v2022_v43 = vsel %vm2015_vm1, %v2491_v41, 0.0 }
 0xf2a   :  { %2023 = vadd.xlane.f32.xlu1 %v2022_v43 }
 0xf2c   :  { %v2493_v15 = vpop.eup %2492 }
 0xf2d   :  { %v2043_v45 = vsel %vm230_vm10, %v2493_v15, 0.0 }
 0xf2e   :  { %2044 = vadd.xlane.f32.xlu1 %v2043_v45 }
 0xfa2   :  { %v2042_v46 = vpop.xlane.xlu0 %2041 }
 0xfa3   :  { %2494 = vrcp.f32 %v2042_v46 }
 0xfad   :  { %v2495_v47 = vpop.eup %2494 }
 0xfae   :  { %v2047_v48 = vmul.f32 %v2495_v47, %v2489_v37 }
 0xfb0   :  { %2050 = vst.msk [vmem:[%s3039_s8] sm:$0xff] %vm230_vm10, %v2047_v48 }
 0xfb7   :  { %v2024_v44 = vpop.xlane.xlu1 %2023 }
 0xfb8   :  { %2496 = vrcp.f32 %v2024_v44 }
 0xfbb   :  { %v2045_v49 = vpop.xlane.xlu1 %2044 }
 0xfbc   :  { %2498 = vrcp.f32 %v2045_v49 }
 0xfc2   :  { %v2497_v50 = vpop.eup %2496 }
 0xfc3   :  { %v2026_v51 = vmul.f32 %v2497_v50, %v2491_v41 }
 0xfc5   :  { %2027 = vst.msk [vmem:[#allocation8] sm:$0xf] %vm2015_vm1, %v2026_v51 }
 0xfc6   :  { %v2499_v52 = vpop.eup %2498 }
 0xfc7   :  { %2557 = shalt.err (!%p2554_p6)
}
 0xfc8   :  { %s2558_s28 = scalar_lea.hbm %s3038_s7, 64 }
 0xfc9   :  { %p2559_p7 = scmp.ne.s32.totalorder %s3038_s7, %s2558_s28  ;;  %p2562_p8 = scmp.lt.u32.totalorder %s2558_s28, %s3038_s7 }
 0xfcb   :  { %p2564_p9 = pnand %p2562_p8, %p2559_p7 }
 0xfcd   :  { %2567 = shalt.err (!%p2564_p9)
}
 0xfce   :  { %2061 = dma.vmem_to_hbm [thread:$0]  %s2059_s26, 64, %s3038_s7, [#allocation5]   ;;  %v2049_v53 = vmul.f32 %v2499_v52, %v2493_v15 }
 0xfd0   :  { %2051 = vst.msk [vmem:[%s3039_s8 + $0x8] sm:$0xff] %vm230_vm10, %v2049_v53 }
 0xfd1   :  { %2572 = dma.done.wait [#allocation5], 64  }
 0xfd2   :  { %2573 = vsyncadd [#allocation5], 4294967232 }
 0xfd3   :  { %2069 = vsyncpa [#allocation4], 1 }
 0xfd4   :  { %2070 = vsyncpa [#allocation7], 1 }
 0xfd5   :  { %2071 = vsyncpa [#allocation5], 1 }

</bundles_post_ra>
